<compile_context>
chip_gen: v5e
topology: v5e:2x2
jax: 0.10.0
libtpu: 0.0.40
codegen_flags: <defaults>
</compile_context>

<pallas_src>
import functools

import jax
import jax.numpy as jnp
from jax.experimental import pallas as pl
from jax.experimental.pallas import tpu as pltpu

# ----------------------------- config (small) -------------------------------
NUM_LABEL = 3
HIDDEN = 32          # args.encoder_hidden_dim
LATENT = 16          # args.latent_dimension
BLOCKS = 2           # args.encoder_blocks
B, S = 2, 64         # batch, sequence length  (x has feature dim 1)
CIN0 = 2 + NUM_LABEL

# static per-layer lengths (Conv1d k=3 stride=1; MaxPool1d(2) floors)
_LC0 = S - 2          # 62  conv0 out
_LP0 = _LC0 // 2      # 31
_LC1 = _LP0 - 2       # 29  conv1 out
_LP1 = _LC1 // 2      # 14
_LC2 = _LP1 - 2       # 12  conv2 out
_LP2 = _LC2 // 2      # 6
_LC3 = _LP2 - 2       # 4   final conv out (no pool)


# --------------------------- fused encoder kernel ---------------------------
def _fused_encoder_kernel(x_ref, span_ref, label_ref,
                          w0_ref, b0_ref, w1_ref, b1_ref,
                          w2_ref, b2_ref, w3_ref, b3_ref,
                          wmu_ref, bmu_ref, wsg_ref, bsg_ref, eps_ref,
                          z_ref, z0_ref, mu_ref, std_ref,
                          scr0, scr1, scr2):
    f32 = jnp.float32

    def silu(v):
        return v * jax.nn.sigmoid(v)

    def maxpool2(acc, scr, lout):
        # MaxPool1d(2): one exact-size VMEM store + two strided sublane reads.
        lp = lout // 2
        scr[...] = acc
        even = scr[pl.ds(0, lp, stride=2), :]
        odd = scr[pl.ds(1, lp, stride=2), :]
        return jnp.maximum(even, odd)

    def conv3(h, w_ref, b_ref, lout):
        # Conv1d(k=3, stride=1), channels-last: 3 shifted (Lout,Cin)@(Cin,Cout).
        acc = b_ref[...]                                      # (1, Cout)
        for k in range(3):
            acc = acc + jnp.dot(h[k:k + lout, :], w_ref[k],
                                preferred_element_type=f32)
        return acc

    # First-layer weight split by input channel (ch0 = x, ch1 = span, ch2: = label).
    w0 = w0_ref[...]                                          # (3, CIN0, HIDDEN)
    w0_lab = w0[0, 2:, :] + w0[1, 2:, :] + w0[2, 2:, :]       # (NUM_LABEL, HIDDEN)

    for b in range(B):                                        # static unroll, B=2
        x_b = x_ref[b]                                        # (S, 1)
        s_b = span_ref[b]                                     # (S, 1)
        lab_b = label_ref[pl.ds(b, 1), :]                     # (1, NUM_LABEL)

        # ---- conv0 (5 -> 32): label channels are constant over length ------
        acc = jnp.dot(lab_b, w0_lab, preferred_element_type=f32) + b0_ref[...]
        for k in range(3):
            acc = acc + x_b[k:k + _LC0, :] * w0[k, 0:1, :]
            acc = acc + s_b[k:k + _LC0, :] * w0[k, 1:2, :]
        h = maxpool2(acc, scr0, _LC0)                         # (31, 32)

        # ---- SiLU -> conv(32->32) -> maxpool, twice -------------------------
        h = silu(h)
        h = maxpool2(conv3(h, w1_ref, b1_ref, _LC1), scr1, _LC1)   # (14, 32)
        h = silu(h)
        h = maxpool2(conv3(h, w2_ref, b2_ref, _LC2), scr2, _LC2)   # (6, 32)

        # ---- SiLU -> conv(32->16), no pool ----------------------------------
        h = silu(h)
        h = conv3(h, w3_ref, b3_ref, _LC3)                    # (4, LATENT)

        # ---- AdaptiveAvgPool1d(1) over length -------------------------------
        z_ref[pl.ds(b, 1), :] = jnp.mean(h, axis=0, keepdims=True)

    # ---- latent heads + reparameterization (whole batch at once) ------------
    z = z_ref[...]                                            # (B, LATENT)
    mu = jnp.dot(z, wmu_ref[...], preferred_element_type=f32) + bmu_ref[...]
    sraw = jnp.dot(z, wsg_ref[...], preferred_element_type=f32) + bsg_ref[...]
    std = jax.nn.softplus(sraw)
    mu_ref[...] = mu
    std_ref[...] = std
    z0_ref[...] = mu + std * eps_ref[...]                     # Normal(mu,std).rsample()


# ------------------------------- full forward -------------------------------
def conv_encoder_forward(params, x, label, span, eps):
    (w0, b0, _, _), (w1, b1, _, _), (w2, b2, _, _), (w3, b3, _, _) = params["convs"]
    vspec = pl.BlockSpec(memory_space=pltpu.MemorySpace.VMEM)
    out_shape = tuple(jax.ShapeDtypeStruct((B, LATENT), jnp.float32)
                      for _ in range(4))
    z, z0, mu, std = pl.pallas_call(
        _fused_encoder_kernel,
        out_shape=out_shape,
        in_specs=[vspec] * 16,
        out_specs=tuple(pl.BlockSpec(memory_space=pltpu.MemorySpace.VMEM)
                        for _ in range(4)),
        scratch_shapes=[
            pltpu.VMEM((_LC0, HIDDEN), jnp.float32),
            pltpu.VMEM((_LC1, HIDDEN), jnp.float32),
            pltpu.VMEM((_LC2, HIDDEN), jnp.float32),
        ],
    )(x, span[..., None], label, w0, b0, w1, b1, w2, b2, w3, b3,
      params["w_mu"], params["b_mu"], params["w_sig"], params["b_sig"], eps)
    # z_dist is returned as its (mean, std) parameters.
    return z, z0, (mu, std)


# --------------------------- pure-JAX reference ------------------------------
def _ref_conv(x, w, b):
    Lout = x.shape[1] - 2
    acc = jnp.zeros((x.shape[0], Lout, w.shape[2]), jnp.float32)
    for k in range(3):
        acc = acc + jnp.einsum("blc,co->blo", x[:, k:k + Lout, :], w[k])
    return acc + b[None, :, :]


def _ref_pool(y):
    Bb, Lout, C = y.shape
    Lp = Lout // 2
    return jnp.max(y[:, :2 * Lp, :].reshape(Bb, Lp, 2, C), axis=2)


def _silu(x):
    return x * jax.nn.sigmoid(x)


def reference_forward(params, x, label, span, eps):
    Bb, Ss, _ = x.shape
    h = jnp.concatenate(
        [x, span[..., None], jnp.broadcast_to(label[:, None, :], (Bb, Ss, NUM_LABEL))],
        axis=-1)
    for (w, b, silu_flag, pool_flag) in params["convs"]:
        if silu_flag:
            h = _silu(h)
        h = _ref_conv(h, w, b)
        if pool_flag:
            h = _ref_pool(h)
    z = jnp.mean(h, axis=1)
    mu = z @ params["w_mu"] + params["b_mu"][0]
    std = jax.nn.softplus(z @ params["w_sig"] + params["b_sig"][0])
    z0 = mu + std * eps
    return z, z0, (mu, std)


# ------------------------------- param init ---------------------------------
def init_params(key):
    # conv weights stored as (K=3, Cin, Cout); biases as (1, Cout);
    # linear weights stored pre-transposed as (in, out); biases as (1, out).
    plan = [(CIN0, HIDDEN, False, True)]
    plan += [(HIDDEN, HIDDEN, True, True) for _ in range(BLOCKS)]
    plan += [(HIDDEN, LATENT, True, False)]
    convs = []
    for (cin, cout, silu_flag, pool_flag) in plan:
        key, kw, kb = jax.random.split(key, 3)
        w = 0.1 * jax.random.normal(kw, (3, cin, cout), jnp.float32)
        b = 0.1 * jax.random.normal(kb, (1, cout), jnp.float32)
        convs.append((w, b, silu_flag, pool_flag))
    key, k1, k2, k3, k4 = jax.random.split(key, 5)
    return {
        "convs": convs,
        "w_mu": 0.1 * jax.random.normal(k1, (LATENT, LATENT), jnp.float32),
        "b_mu": 0.1 * jax.random.normal(k2, (1, LATENT), jnp.float32),
        "w_sig": 0.1 * jax.random.normal(k3, (LATENT, LATENT), jnp.float32),
        "b_sig": 0.1 * jax.random.normal(k4, (1, LATENT), jnp.float32),
    }


# ----------------------------------- main ------------------------------------
if __name__ == "__main__":
    root = jax.random.PRNGKey(0)
    kp, kx, kl, ks, ke = jax.random.split(root, 5)

    params = init_params(kp)
    x = jax.random.normal(kx, (B, S, 1), jnp.float32)
    label = jax.random.normal(kl, (B, NUM_LABEL), jnp.float32)
    span = jax.random.normal(ks, (B, S), jnp.float32)
    # reparameterization noise (the stochastic part of Normal.rsample), fixed:
    eps = jax.random.normal(ke, (B, LATENT), jnp.float32)

    fwd = jax.jit(functools.partial(conv_encoder_forward, params))
    out, z0, (mu, std) = fwd(x, label, span, eps)
    jax.block_until_ready((out, z0, mu, std))

    r_out, r_z0, (r_mu, r_std) = reference_forward(params, x, label, span, eps)
    ok = (jnp.allclose(out, r_out, atol=2e-2, rtol=2e-2)
          and jnp.allclose(z0, r_z0, atol=2e-2, rtol=2e-2)
          and jnp.allclose(mu, r_mu, atol=2e-2, rtol=2e-2)
          and jnp.allclose(std, r_std, atol=2e-2, rtol=2e-2))
    assert bool(ok), "Pallas output does not match JAX reference"
    print("KERNEL_OK")
</pallas_src>

<mosaic_0001>
module attributes {stable_mosaic.version = 11 : i64} {
  func.func @_fused_encoder_kernel(%arg0: memref<2x64x1xf32, #tpu.memory_space<vmem>>, %arg1: memref<2x64x1xf32, #tpu.memory_space<vmem>>, %arg2: memref<2x3xf32, #tpu.memory_space<vmem>>, %arg3: memref<3x5x32xf32, #tpu.memory_space<vmem>>, %arg4: memref<1x32xf32, #tpu.memory_space<vmem>>, %arg5: memref<3x32x32xf32, #tpu.memory_space<vmem>>, %arg6: memref<1x32xf32, #tpu.memory_space<vmem>>, %arg7: memref<3x32x32xf32, #tpu.memory_space<vmem>>, %arg8: memref<1x32xf32, #tpu.memory_space<vmem>>, %arg9: memref<3x32x16xf32, #tpu.memory_space<vmem>>, %arg10: memref<1x16xf32, #tpu.memory_space<vmem>>, %arg11: memref<16x16xf32, #tpu.memory_space<vmem>>, %arg12: memref<1x16xf32, #tpu.memory_space<vmem>>, %arg13: memref<16x16xf32, #tpu.memory_space<vmem>>, %arg14: memref<1x16xf32, #tpu.memory_space<vmem>>, %arg15: memref<2x16xf32, #tpu.memory_space<vmem>>, %arg16: memref<2x16xf32, #tpu.memory_space<vmem>>, %arg17: memref<2x16xf32, #tpu.memory_space<vmem>>, %arg18: memref<2x16xf32, #tpu.memory_space<vmem>>, %arg19: memref<2x16xf32, #tpu.memory_space<vmem>>, %arg20: memref<62x32xf32, #tpu.memory_space<vmem>>, %arg21: memref<29x32xf32, #tpu.memory_space<vmem>>, %arg22: memref<12x32xf32, #tpu.memory_space<vmem>>) attributes {dimension_semantics = [], scalar_prefetch = 0 : i64, scratch_operands = 3 : i64, tpu.core_type = #tpu.core_type<tc>} {
    %c0 = arith.constant 0 : index
    %c0_0 = arith.constant 0 : index
    %c0_1 = arith.constant 0 : index
    %0 = vector.load %arg3[%c0, %c0_0, %c0_1] : memref<3x5x32xf32, #tpu.memory_space<vmem>>, vector<3x5x32xf32>
    %1 = vector.extract_strided_slice %0 {offsets = [0, 2, 0], sizes = [1, 3, 32], strides = [1, 1, 1]} : vector<3x5x32xf32> to vector<1x3x32xf32>
    %2 = vector.shape_cast %1 : vector<1x3x32xf32> to vector<3x32xf32>
    %3 = vector.extract_strided_slice %0 {offsets = [1, 2, 0], sizes = [1, 3, 32], strides = [1, 1, 1]} : vector<3x5x32xf32> to vector<1x3x32xf32>
    %4 = vector.shape_cast %3 : vector<1x3x32xf32> to vector<3x32xf32>
    %5 = arith.addf %2, %4 : vector<3x32xf32>
    %6 = vector.extract_strided_slice %0 {offsets = [2, 2, 0], sizes = [1, 3, 32], strides = [1, 1, 1]} : vector<3x5x32xf32> to vector<1x3x32xf32>
    %7 = vector.shape_cast %6 : vector<1x3x32xf32> to vector<3x32xf32>
    %8 = arith.addf %5, %7 : vector<3x32xf32>
    %c0_2 = arith.constant 0 : index
    %c0_3 = arith.constant 0 : index
    %c0_4 = arith.constant 0 : index
    %9 = vector.load %arg0[%c0_2, %c0_3, %c0_4] : memref<2x64x1xf32, #tpu.memory_space<vmem>>, vector<1x64x1xf32>
    %10 = vector.shape_cast %9 : vector<1x64x1xf32> to vector<64x1xf32>
    %c0_5 = arith.constant 0 : index
    %c0_6 = arith.constant 0 : index
    %c0_7 = arith.constant 0 : index
    %11 = vector.load %arg1[%c0_5, %c0_6, %c0_7] : memref<2x64x1xf32, #tpu.memory_space<vmem>>, vector<1x64x1xf32>
    %12 = vector.shape_cast %11 : vector<1x64x1xf32> to vector<64x1xf32>
    %c0_8 = arith.constant 0 : index
    %c0_9 = arith.constant 0 : index
    %13 = vector.load %arg2[%c0_8, %c0_9] : memref<2x3xf32, #tpu.memory_space<vmem>>, vector<1x3xf32>
    %cst = arith.constant dense<0.000000e+00> : vector<1x32xf32>
    %14 = tpu.matmul %13, %8, %cst {dimension_numbers = #tpu.dot_dimension_numbers<[1], [0], [0], [1], [0, 0, 1, 1], [], []>} : vector<1x3xf32>, vector<3x32xf32>, vector<1x32xf32> -> vector<1x32xf32>
    %c0_10 = arith.constant 0 : index
    %c0_11 = arith.constant 0 : index
    %15 = vector.load %arg4[%c0_10, %c0_11] : memref<1x32xf32, #tpu.memory_space<vmem>>, vector<1x32xf32>
    %16 = arith.addf %14, %15 : vector<1x32xf32>
    %17 = vector.extract_strided_slice %10 {offsets = [0, 0], sizes = [62, 1], strides = [1, 1]} : vector<64x1xf32> to vector<62x1xf32>
    %18 = vector.extract_strided_slice %0 {offsets = [0, 0, 0], sizes = [1, 1, 32], strides = [1, 1, 1]} : vector<3x5x32xf32> to vector<1x1x32xf32>
    %19 = vector.shape_cast %18 : vector<1x1x32xf32> to vector<1x32xf32>
    %20 = vector.broadcast %17 : vector<62x1xf32> to vector<62x32xf32>
    %21 = vector.broadcast %19 : vector<1x32xf32> to vector<62x32xf32>
    %22 = arith.mulf %20, %21 : vector<62x32xf32>
    %23 = vector.broadcast %16 : vector<1x32xf32> to vector<62x32xf32>
    %24 = arith.addf %23, %22 : vector<62x32xf32>
    %25 = vector.extract_strided_slice %12 {offsets = [0, 0], sizes = [62, 1], strides = [1, 1]} : vector<64x1xf32> to vector<62x1xf32>
    %26 = vector.extract_strided_slice %0 {offsets = [0, 1, 0], sizes = [1, 1, 32], strides = [1, 1, 1]} : vector<3x5x32xf32> to vector<1x1x32xf32>
    %27 = vector.shape_cast %26 : vector<1x1x32xf32> to vector<1x32xf32>
    %28 = vector.broadcast %25 : vector<62x1xf32> to vector<62x32xf32>
    %29 = vector.broadcast %27 : vector<1x32xf32> to vector<62x32xf32>
    %30 = arith.mulf %28, %29 : vector<62x32xf32>
    %31 = arith.addf %24, %30 : vector<62x32xf32>
    %32 = vector.extract_strided_slice %10 {offsets = [1, 0], sizes = [62, 1], strides = [1, 1]} : vector<64x1xf32> to vector<62x1xf32>
    %33 = vector.extract_strided_slice %0 {offsets = [1, 0, 0], sizes = [1, 1, 32], strides = [1, 1, 1]} : vector<3x5x32xf32> to vector<1x1x32xf32>
    %34 = vector.shape_cast %33 : vector<1x1x32xf32> to vector<1x32xf32>
    %35 = vector.broadcast %32 : vector<62x1xf32> to vector<62x32xf32>
    %36 = vector.broadcast %34 : vector<1x32xf32> to vector<62x32xf32>
    %37 = arith.mulf %35, %36 : vector<62x32xf32>
    %38 = arith.addf %31, %37 : vector<62x32xf32>
    %39 = vector.extract_strided_slice %12 {offsets = [1, 0], sizes = [62, 1], strides = [1, 1]} : vector<64x1xf32> to vector<62x1xf32>
    %40 = vector.extract_strided_slice %0 {offsets = [1, 1, 0], sizes = [1, 1, 32], strides = [1, 1, 1]} : vector<3x5x32xf32> to vector<1x1x32xf32>
    %41 = vector.shape_cast %40 : vector<1x1x32xf32> to vector<1x32xf32>
    %42 = vector.broadcast %39 : vector<62x1xf32> to vector<62x32xf32>
    %43 = vector.broadcast %41 : vector<1x32xf32> to vector<62x32xf32>
    %44 = arith.mulf %42, %43 : vector<62x32xf32>
    %45 = arith.addf %38, %44 : vector<62x32xf32>
    %46 = vector.extract_strided_slice %10 {offsets = [2, 0], sizes = [62, 1], strides = [1, 1]} : vector<64x1xf32> to vector<62x1xf32>
    %47 = vector.extract_strided_slice %0 {offsets = [2, 0, 0], sizes = [1, 1, 32], strides = [1, 1, 1]} : vector<3x5x32xf32> to vector<1x1x32xf32>
    %48 = vector.shape_cast %47 : vector<1x1x32xf32> to vector<1x32xf32>
    %49 = vector.broadcast %46 : vector<62x1xf32> to vector<62x32xf32>
    %50 = vector.broadcast %48 : vector<1x32xf32> to vector<62x32xf32>
    %51 = arith.mulf %49, %50 : vector<62x32xf32>
    %52 = arith.addf %45, %51 : vector<62x32xf32>
    %53 = vector.extract_strided_slice %12 {offsets = [2, 0], sizes = [62, 1], strides = [1, 1]} : vector<64x1xf32> to vector<62x1xf32>
    %54 = vector.extract_strided_slice %0 {offsets = [2, 1, 0], sizes = [1, 1, 32], strides = [1, 1, 1]} : vector<3x5x32xf32> to vector<1x1x32xf32>
    %55 = vector.shape_cast %54 : vector<1x1x32xf32> to vector<1x32xf32>
    %56 = vector.broadcast %53 : vector<62x1xf32> to vector<62x32xf32>
    %57 = vector.broadcast %55 : vector<1x32xf32> to vector<62x32xf32>
    %58 = arith.mulf %56, %57 : vector<62x32xf32>
    %59 = arith.addf %52, %58 : vector<62x32xf32>
    %c0_12 = arith.constant 0 : index
    %c0_13 = arith.constant 0 : index
    %60 = vector.load %arg20[%c0_12, %c0_13] : memref<62x32xf32, #tpu.memory_space<vmem>>, vector<62x32xf32>
    tpu.vector_store %arg20[%c0_12, %c0_13], %59 {strides = array<i32>} : memref<62x32xf32, #tpu.memory_space<vmem>>, vector<62x32xf32>,
    %c0_14 = arith.constant 0 : index
    %c0_15 = arith.constant 0 : index
    %61 = tpu.strided_load %arg20[%c0_14, %c0_15] {strides = array<i32: 2, 1>} : memref<62x32xf32, #tpu.memory_space<vmem>>, vector<31x32xf32>
    %c1 = arith.constant 1 : index
    %c0_16 = arith.constant 0 : index
    %62 = tpu.strided_load %arg20[%c1, %c0_16] {strides = array<i32: 2, 1>} : memref<62x32xf32, #tpu.memory_space<vmem>>, vector<31x32xf32>
    %63 = arith.maximumf %61, %62 : vector<31x32xf32>
    %64 = arith.negf %63 : vector<31x32xf32>
    %65 = math.exp %64 : vector<31x32xf32>
    %cst_17 = arith.constant 1.000000e+00 : f32
    %66 = vector.broadcast %cst_17 : f32 to vector<31x32xf32>
    %67 = arith.addf %66, %65 : vector<31x32xf32>
    %68 = arith.divf %66, %67 : vector<31x32xf32>
    %69 = arith.mulf %63, %68 : vector<31x32xf32>
    %c0_18 = arith.constant 0 : index
    %c0_19 = arith.constant 0 : index
    %70 = vector.load %arg6[%c0_18, %c0_19] : memref<1x32xf32, #tpu.memory_space<vmem>>, vector<1x32xf32>
    %71 = vector.extract_strided_slice %69 {offsets = [0, 0], sizes = [29, 32], strides = [1, 1]} : vector<31x32xf32> to vector<29x32xf32>
    %c0_20 = arith.constant 0 : index
    %c0_21 = arith.constant 0 : index
    %c0_22 = arith.constant 0 : index
    %72 = vector.load %arg5[%c0_20, %c0_21, %c0_22] : memref<3x32x32xf32, #tpu.memory_space<vmem>>, vector<1x32x32xf32>
    %73 = vector.shape_cast %72 : vector<1x32x32xf32> to vector<32x32xf32>
    %cst_23 = arith.constant dense<0.000000e+00> : vector<29x32xf32>
    %74 = tpu.matmul %71, %73, %cst_23 {dimension_numbers = #tpu.dot_dimension_numbers<[1], [0], [0], [1], [0, 0, 1, 1], [], []>} : vector<29x32xf32>, vector<32x32xf32>, vector<29x32xf32> -> vector<29x32xf32>
    %75 = vector.broadcast %70 : vector<1x32xf32> to vector<29x32xf32>
    %76 = arith.addf %75, %74 : vector<29x32xf32>
    %77 = vector.extract_strided_slice %69 {offsets = [1, 0], sizes = [29, 32], strides = [1, 1]} : vector<31x32xf32> to vector<29x32xf32>
    %c1_24 = arith.constant 1 : index
    %c0_25 = arith.constant 0 : index
    %c0_26 = arith.constant 0 : index
    %78 = vector.load %arg5[%c1_24, %c0_25, %c0_26] : memref<3x32x32xf32, #tpu.memory_space<vmem>>, vector<1x32x32xf32>
    %79 = vector.shape_cast %78 : vector<1x32x32xf32> to vector<32x32xf32>
    %cst_27 = arith.constant dense<0.000000e+00> : vector<29x32xf32>
    %80 = tpu.matmul %77, %79, %cst_27 {dimension_numbers = #tpu.dot_dimension_numbers<[1], [0], [0], [1], [0, 0, 1, 1], [], []>} : vector<29x32xf32>, vector<32x32xf32>, vector<29x32xf32> -> vector<29x32xf32>
    %81 = arith.addf %76, %80 : vector<29x32xf32>
    %82 = vector.extract_strided_slice %69 {offsets = [2, 0], sizes = [29, 32], strides = [1, 1]} : vector<31x32xf32> to vector<29x32xf32>
    %c2 = arith.constant 2 : index
    %c0_28 = arith.constant 0 : index
    %c0_29 = arith.constant 0 : index
    %83 = vector.load %arg5[%c2, %c0_28, %c0_29] : memref<3x32x32xf32, #tpu.memory_space<vmem>>, vector<1x32x32xf32>
    %84 = vector.shape_cast %83 : vector<1x32x32xf32> to vector<32x32xf32>
    %cst_30 = arith.constant dense<0.000000e+00> : vector<29x32xf32>
    %85 = tpu.matmul %82, %84, %cst_30 {dimension_numbers = #tpu.dot_dimension_numbers<[1], [0], [0], [1], [0, 0, 1, 1], [], []>} : vector<29x32xf32>, vector<32x32xf32>, vector<29x32xf32> -> vector<29x32xf32>
    %86 = arith.addf %81, %85 : vector<29x32xf32>
    %c0_31 = arith.constant 0 : index
    %c0_32 = arith.constant 0 : index
    %87 = vector.load %arg21[%c0_31, %c0_32] : memref<29x32xf32, #tpu.memory_space<vmem>>, vector<29x32xf32>
    tpu.vector_store %arg21[%c0_31, %c0_32], %86 {strides = array<i32>} : memref<29x32xf32, #tpu.memory_space<vmem>>, vector<29x32xf32>,
    %c0_33 = arith.constant 0 : index
    %c0_34 = arith.constant 0 : index
    %88 = tpu.strided_load %arg21[%c0_33, %c0_34] {strides = array<i32: 2, 1>} : memref<29x32xf32, #tpu.memory_space<vmem>>, vector<14x32xf32>
    %c1_35 = arith.constant 1 : index
    %c0_36 = arith.constant 0 : index
    %89 = tpu.strided_load %arg21[%c1_35, %c0_36] {strides = array<i32: 2, 1>} : memref<29x32xf32, #tpu.memory_space<vmem>>, vector<14x32xf32>
    %90 = arith.maximumf %88, %89 : vector<14x32xf32>
    %91 = arith.negf %90 : vector<14x32xf32>
    %92 = math.exp %91 : vector<14x32xf32>
    %cst_37 = arith.constant 1.000000e+00 : f32
    %93 = vector.broadcast %cst_37 : f32 to vector<14x32xf32>
    %94 = arith.addf %93, %92 : vector<14x32xf32>
    %95 = arith.divf %93, %94 : vector<14x32xf32>
    %96 = arith.mulf %90, %95 : vector<14x32xf32>
    %c0_38 = arith.constant 0 : index
    %c0_39 = arith.constant 0 : index
    %97 = vector.load %arg8[%c0_38, %c0_39] : memref<1x32xf32, #tpu.memory_space<vmem>>, vector<1x32xf32>
    %98 = vector.extract_strided_slice %96 {offsets = [0, 0], sizes = [12, 32], strides = [1, 1]} : vector<14x32xf32> to vector<12x32xf32>
    %c0_40 = arith.constant 0 : index
    %c0_41 = arith.constant 0 : index
    %c0_42 = arith.constant 0 : index
    %99 = vector.load %arg7[%c0_40, %c0_41, %c0_42] : memref<3x32x32xf32, #tpu.memory_space<vmem>>, vector<1x32x32xf32>
    %100 = vector.shape_cast %99 : vector<1x32x32xf32> to vector<32x32xf32>
    %cst_43 = arith.constant dense<0.000000e+00> : vector<12x32xf32>
    %101 = tpu.matmul %98, %100, %cst_43 {dimension_numbers = #tpu.dot_dimension_numbers<[1], [0], [0], [1], [0, 0, 1, 1], [], []>} : vector<12x32xf32>, vector<32x32xf32>, vector<12x32xf32> -> vector<12x32xf32>
    %102 = vector.broadcast %97 : vector<1x32xf32> to vector<12x32xf32>
    %103 = arith.addf %102, %101 : vector<12x32xf32>
    %104 = vector.extract_strided_slice %96 {offsets = [1, 0], sizes = [12, 32], strides = [1, 1]} : vector<14x32xf32> to vector<12x32xf32>
    %c1_44 = arith.constant 1 : index
    %c0_45 = arith.constant 0 : index
    %c0_46 = arith.constant 0 : index
    %105 = vector.load %arg7[%c1_44, %c0_45, %c0_46] : memref<3x32x32xf32, #tpu.memory_space<vmem>>, vector<1x32x32xf32>
    %106 = vector.shape_cast %105 : vector<1x32x32xf32> to vector<32x32xf32>
    %cst_47 = arith.constant dense<0.000000e+00> : vector<12x32xf32>
    %107 = tpu.matmul %104, %106, %cst_47 {dimension_numbers = #tpu.dot_dimension_numbers<[1], [0], [0], [1], [0, 0, 1, 1], [], []>} : vector<12x32xf32>, vector<32x32xf32>, vector<12x32xf32> -> vector<12x32xf32>
    %108 = arith.addf %103, %107 : vector<12x32xf32>
    %109 = vector.extract_strided_slice %96 {offsets = [2, 0], sizes = [12, 32], strides = [1, 1]} : vector<14x32xf32> to vector<12x32xf32>
    %c2_48 = arith.constant 2 : index
    %c0_49 = arith.constant 0 : index
    %c0_50 = arith.constant 0 : index
    %110 = vector.load %arg7[%c2_48, %c0_49, %c0_50] : memref<3x32x32xf32, #tpu.memory_space<vmem>>, vector<1x32x32xf32>
    %111 = vector.shape_cast %110 : vector<1x32x32xf32> to vector<32x32xf32>
    %cst_51 = arith.constant dense<0.000000e+00> : vector<12x32xf32>
    %112 = tpu.matmul %109, %111, %cst_51 {dimension_numbers = #tpu.dot_dimension_numbers<[1], [0], [0], [1], [0, 0, 1, 1], [], []>} : vector<12x32xf32>, vector<32x32xf32>, vector<12x32xf32> -> vector<12x32xf32>
    %113 = arith.addf %108, %112 : vector<12x32xf32>
    %c0_52 = arith.constant 0 : index
    %c0_53 = arith.constant 0 : index
    %114 = vector.load %arg22[%c0_52, %c0_53] : memref<12x32xf32, #tpu.memory_space<vmem>>, vector<12x32xf32>
    tpu.vector_store %arg22[%c0_52, %c0_53], %113 {strides = array<i32>} : memref<12x32xf32, #tpu.memory_space<vmem>>, vector<12x32xf32>,
    %c0_54 = arith.constant 0 : index
    %c0_55 = arith.constant 0 : index
    %115 = tpu.strided_load %arg22[%c0_54, %c0_55] {strides = array<i32: 2, 1>} : memref<12x32xf32, #tpu.memory_space<vmem>>, vector<6x32xf32>
    %c1_56 = arith.constant 1 : index
    %c0_57 = arith.constant 0 : index
    %116 = tpu.strided_load %arg22[%c1_56, %c0_57] {strides = array<i32: 2, 1>} : memref<12x32xf32, #tpu.memory_space<vmem>>, vector<6x32xf32>
    %117 = arith.maximumf %115, %116 : vector<6x32xf32>
    %118 = arith.negf %117 : vector<6x32xf32>
    %119 = math.exp %118 : vector<6x32xf32>
    %cst_58 = arith.constant 1.000000e+00 : f32
    %120 = vector.broadcast %cst_58 : f32 to vector<6x32xf32>
    %121 = arith.addf %120, %119 : vector<6x32xf32>
    %122 = arith.divf %120, %121 : vector<6x32xf32>
    %123 = arith.mulf %117, %122 : vector<6x32xf32>
    %c0_59 = arith.constant 0 : index
    %c0_60 = arith.constant 0 : index
    %124 = vector.load %arg10[%c0_59, %c0_60] : memref<1x16xf32, #tpu.memory_space<vmem>>, vector<1x16xf32>
    %125 = vector.extract_strided_slice %123 {offsets = [0, 0], sizes = [4, 32], strides = [1, 1]} : vector<6x32xf32> to vector<4x32xf32>
    %c0_61 = arith.constant 0 : index
    %c0_62 = arith.constant 0 : index
    %c0_63 = arith.constant 0 : index
    %126 = vector.load %arg9[%c0_61, %c0_62, %c0_63] : memref<3x32x16xf32, #tpu.memory_space<vmem>>, vector<1x32x16xf32>
    %127 = vector.shape_cast %126 : vector<1x32x16xf32> to vector<32x16xf32>
    %cst_64 = arith.constant dense<0.000000e+00> : vector<4x16xf32>
    %128 = tpu.matmul %125, %127, %cst_64 {dimension_numbers = #tpu.dot_dimension_numbers<[1], [0], [0], [1], [0, 0, 1, 1], [], []>} : vector<4x32xf32>, vector<32x16xf32>, vector<4x16xf32> -> vector<4x16xf32>
    %129 = vector.broadcast %124 : vector<1x16xf32> to vector<4x16xf32>
    %130 = arith.addf %129, %128 : vector<4x16xf32>
    %131 = vector.extract_strided_slice %123 {offsets = [1, 0], sizes = [4, 32], strides = [1, 1]} : vector<6x32xf32> to vector<4x32xf32>
    %c1_65 = arith.constant 1 : index
    %c0_66 = arith.constant 0 : index
    %c0_67 = arith.constant 0 : index
    %132 = vector.load %arg9[%c1_65, %c0_66, %c0_67] : memref<3x32x16xf32, #tpu.memory_space<vmem>>, vector<1x32x16xf32>
    %133 = vector.shape_cast %132 : vector<1x32x16xf32> to vector<32x16xf32>
    %cst_68 = arith.constant dense<0.000000e+00> : vector<4x16xf32>
    %134 = tpu.matmul %131, %133, %cst_68 {dimension_numbers = #tpu.dot_dimension_numbers<[1], [0], [0], [1], [0, 0, 1, 1], [], []>} : vector<4x32xf32>, vector<32x16xf32>, vector<4x16xf32> -> vector<4x16xf32>
    %135 = arith.addf %130, %134 : vector<4x16xf32>
    %136 = vector.extract_strided_slice %123 {offsets = [2, 0], sizes = [4, 32], strides = [1, 1]} : vector<6x32xf32> to vector<4x32xf32>
    %c2_69 = arith.constant 2 : index
    %c0_70 = arith.constant 0 : index
    %c0_71 = arith.constant 0 : index
    %137 = vector.load %arg9[%c2_69, %c0_70, %c0_71] : memref<3x32x16xf32, #tpu.memory_space<vmem>>, vector<1x32x16xf32>
    %138 = vector.shape_cast %137 : vector<1x32x16xf32> to vector<32x16xf32>
    %cst_72 = arith.constant dense<0.000000e+00> : vector<4x16xf32>
    %139 = tpu.matmul %136, %138, %cst_72 {dimension_numbers = #tpu.dot_dimension_numbers<[1], [0], [0], [1], [0, 0, 1, 1], [], []>} : vector<4x32xf32>, vector<32x16xf32>, vector<4x16xf32> -> vector<4x16xf32>
    %140 = arith.addf %135, %139 : vector<4x16xf32>
    %cst_73 = arith.constant dense<0.000000e+00> : vector<16xf32>
    %141 = vector.multi_reduction <add>, %140, %cst_73 [0] : vector<4x16xf32> to vector<16xf32>
    %142 = vector.shape_cast %141 : vector<16xf32> to vector<1x16xf32>
    %cst_74 = arith.constant 4.000000e+00 : f32
    %143 = vector.broadcast %cst_74 : f32 to vector<1x16xf32>
    %144 = arith.divf %142, %143 : vector<1x16xf32>
    %c0_75 = arith.constant 0 : index
    %c0_76 = arith.constant 0 : index
    %145 = vector.load %arg16[%c0_75, %c0_76] : memref<2x16xf32, #tpu.memory_space<vmem>>, vector<1x16xf32>
    tpu.vector_store %arg16[%c0_75, %c0_76], %144 {strides = array<i32>} : memref<2x16xf32, #tpu.memory_space<vmem>>, vector<1x16xf32>,
    %c1_77 = arith.constant 1 : index
    %c0_78 = arith.constant 0 : index
    %c0_79 = arith.constant 0 : index
    %146 = vector.load %arg0[%c1_77, %c0_78, %c0_79] : memref<2x64x1xf32, #tpu.memory_space<vmem>>, vector<1x64x1xf32>
    %147 = vector.shape_cast %146 : vector<1x64x1xf32> to vector<64x1xf32>
    %c1_80 = arith.constant 1 : index
    %c0_81 = arith.constant 0 : index
    %c0_82 = arith.constant 0 : index
    %148 = vector.load %arg1[%c1_80, %c0_81, %c0_82] : memref<2x64x1xf32, #tpu.memory_space<vmem>>, vector<1x64x1xf32>
    %149 = vector.shape_cast %148 : vector<1x64x1xf32> to vector<64x1xf32>
    %c1_83 = arith.constant 1 : index
    %c0_84 = arith.constant 0 : index
    %150 = vector.load %arg2[%c1_83, %c0_84] : memref<2x3xf32, #tpu.memory_space<vmem>>, vector<1x3xf32>
    %cst_85 = arith.constant dense<0.000000e+00> : vector<1x32xf32>
    %151 = tpu.matmul %150, %8, %cst_85 {dimension_numbers = #tpu.dot_dimension_numbers<[1], [0], [0], [1], [0, 0, 1, 1], [], []>} : vector<1x3xf32>, vector<3x32xf32>, vector<1x32xf32> -> vector<1x32xf32>
    %c0_86 = arith.constant 0 : index
    %c0_87 = arith.constant 0 : index
    %152 = vector.load %arg4[%c0_86, %c0_87] : memref<1x32xf32, #tpu.memory_space<vmem>>, vector<1x32xf32>
    %153 = arith.addf %151, %152 : vector<1x32xf32>
    %154 = vector.extract_strided_slice %147 {offsets = [0, 0], sizes = [62, 1], strides = [1, 1]} : vector<64x1xf32> to vector<62x1xf32>
    %155 = vector.extract_strided_slice %0 {offsets = [0, 0, 0], sizes = [1, 1, 32], strides = [1, 1, 1]} : vector<3x5x32xf32> to vector<1x1x32xf32>
    %156 = vector.shape_cast %155 : vector<1x1x32xf32> to vector<1x32xf32>
    %157 = vector.broadcast %154 : vector<62x1xf32> to vector<62x32xf32>
    %158 = vector.broadcast %156 : vector<1x32xf32> to vector<62x32xf32>
    %159 = arith.mulf %157, %158 : vector<62x32xf32>
    %160 = vector.broadcast %153 : vector<1x32xf32> to vector<62x32xf32>
    %161 = arith.addf %160, %159 : vector<62x32xf32>
    %162 = vector.extract_strided_slice %149 {offsets = [0, 0], sizes = [62, 1], strides = [1, 1]} : vector<64x1xf32> to vector<62x1xf32>
    %163 = vector.extract_strided_slice %0 {offsets = [0, 1, 0], sizes = [1, 1, 32], strides = [1, 1, 1]} : vector<3x5x32xf32> to vector<1x1x32xf32>
    %164 = vector.shape_cast %163 : vector<1x1x32xf32> to vector<1x32xf32>
    %165 = vector.broadcast %162 : vector<62x1xf32> to vector<62x32xf32>
    %166 = vector.broadcast %164 : vector<1x32xf32> to vector<62x32xf32>
    %167 = arith.mulf %165, %166 : vector<62x32xf32>
    %168 = arith.addf %161, %167 : vector<62x32xf32>
    %169 = vector.extract_strided_slice %147 {offsets = [1, 0], sizes = [62, 1], strides = [1, 1]} : vector<64x1xf32> to vector<62x1xf32>
    %170 = vector.extract_strided_slice %0 {offsets = [1, 0, 0], sizes = [1, 1, 32], strides = [1, 1, 1]} : vector<3x5x32xf32> to vector<1x1x32xf32>
    %171 = vector.shape_cast %170 : vector<1x1x32xf32> to vector<1x32xf32>
    %172 = vector.broadcast %169 : vector<62x1xf32> to vector<62x32xf32>
    %173 = vector.broadcast %171 : vector<1x32xf32> to vector<62x32xf32>
    %174 = arith.mulf %172, %173 : vector<62x32xf32>
    %175 = arith.addf %168, %174 : vector<62x32xf32>
    %176 = vector.extract_strided_slice %149 {offsets = [1, 0], sizes = [62, 1], strides = [1, 1]} : vector<64x1xf32> to vector<62x1xf32>
    %177 = vector.extract_strided_slice %0 {offsets = [1, 1, 0], sizes = [1, 1, 32], strides = [1, 1, 1]} : vector<3x5x32xf32> to vector<1x1x32xf32>
    %178 = vector.shape_cast %177 : vector<1x1x32xf32> to vector<1x32xf32>
    %179 = vector.broadcast %176 : vector<62x1xf32> to vector<62x32xf32>
    %180 = vector.broadcast %178 : vector<1x32xf32> to vector<62x32xf32>
    %181 = arith.mulf %179, %180 : vector<62x32xf32>
    %182 = arith.addf %175, %181 : vector<62x32xf32>
    %183 = vector.extract_strided_slice %147 {offsets = [2, 0], sizes = [62, 1], strides = [1, 1]} : vector<64x1xf32> to vector<62x1xf32>
    %184 = vector.extract_strided_slice %0 {offsets = [2, 0, 0], sizes = [1, 1, 32], strides = [1, 1, 1]} : vector<3x5x32xf32> to vector<1x1x32xf32>
    %185 = vector.shape_cast %184 : vector<1x1x32xf32> to vector<1x32xf32>
    %186 = vector.broadcast %183 : vector<62x1xf32> to vector<62x32xf32>
    %187 = vector.broadcast %185 : vector<1x32xf32> to vector<62x32xf32>
    %188 = arith.mulf %186, %187 : vector<62x32xf32>
    %189 = arith.addf %182, %188 : vector<62x32xf32>
    %190 = vector.extract_strided_slice %149 {offsets = [2, 0], sizes = [62, 1], strides = [1, 1]} : vector<64x1xf32> to vector<62x1xf32>
    %191 = vector.extract_strided_slice %0 {offsets = [2, 1, 0], sizes = [1, 1, 32], strides = [1, 1, 1]} : vector<3x5x32xf32> to vector<1x1x32xf32>
    %192 = vector.shape_cast %191 : vector<1x1x32xf32> to vector<1x32xf32>
    %193 = vector.broadcast %190 : vector<62x1xf32> to vector<62x32xf32>
    %194 = vector.broadcast %192 : vector<1x32xf32> to vector<62x32xf32>
    %195 = arith.mulf %193, %194 : vector<62x32xf32>
    %196 = arith.addf %189, %195 : vector<62x32xf32>
    %c0_88 = arith.constant 0 : index
    %c0_89 = arith.constant 0 : index
    %197 = vector.load %arg20[%c0_88, %c0_89] : memref<62x32xf32, #tpu.memory_space<vmem>>, vector<62x32xf32>
    tpu.vector_store %arg20[%c0_88, %c0_89], %196 {strides = array<i32>} : memref<62x32xf32, #tpu.memory_space<vmem>>, vector<62x32xf32>,
    %c0_90 = arith.constant 0 : index
    %c0_91 = arith.constant 0 : index
    %198 = tpu.strided_load %arg20[%c0_90, %c0_91] {strides = array<i32: 2, 1>} : memref<62x32xf32, #tpu.memory_space<vmem>>, vector<31x32xf32>
    %c1_92 = arith.constant 1 : index
    %c0_93 = arith.constant 0 : index
    %199 = tpu.strided_load %arg20[%c1_92, %c0_93] {strides = array<i32: 2, 1>} : memref<62x32xf32, #tpu.memory_space<vmem>>, vector<31x32xf32>
    %200 = arith.maximumf %198, %199 : vector<31x32xf32>
    %201 = arith.negf %200 : vector<31x32xf32>
    %202 = math.exp %201 : vector<31x32xf32>
    %cst_94 = arith.constant 1.000000e+00 : f32
    %203 = vector.broadcast %cst_94 : f32 to vector<31x32xf32>
    %204 = arith.addf %203, %202 : vector<31x32xf32>
    %205 = arith.divf %203, %204 : vector<31x32xf32>
    %206 = arith.mulf %200, %205 : vector<31x32xf32>
    %c0_95 = arith.constant 0 : index
    %c0_96 = arith.constant 0 : index
    %207 = vector.load %arg6[%c0_95, %c0_96] : memref<1x32xf32, #tpu.memory_space<vmem>>, vector<1x32xf32>
    %208 = vector.extract_strided_slice %206 {offsets = [0, 0], sizes = [29, 32], strides = [1, 1]} : vector<31x32xf32> to vector<29x32xf32>
    %c0_97 = arith.constant 0 : index
    %c0_98 = arith.constant 0 : index
    %c0_99 = arith.constant 0 : index
    %209 = vector.load %arg5[%c0_97, %c0_98, %c0_99] : memref<3x32x32xf32, #tpu.memory_space<vmem>>, vector<1x32x32xf32>
    %210 = vector.shape_cast %209 : vector<1x32x32xf32> to vector<32x32xf32>
    %cst_100 = arith.constant dense<0.000000e+00> : vector<29x32xf32>
    %211 = tpu.matmul %208, %210, %cst_100 {dimension_numbers = #tpu.dot_dimension_numbers<[1], [0], [0], [1], [0, 0, 1, 1], [], []>} : vector<29x32xf32>, vector<32x32xf32>, vector<29x32xf32> -> vector<29x32xf32>
    %212 = vector.broadcast %207 : vector<1x32xf32> to vector<29x32xf32>
    %213 = arith.addf %212, %211 : vector<29x32xf32>
    %214 = vector.extract_strided_slice %206 {offsets = [1, 0], sizes = [29, 32], strides = [1, 1]} : vector<31x32xf32> to vector<29x32xf32>
    %c1_101 = arith.constant 1 : index
    %c0_102 = arith.constant 0 : index
    %c0_103 = arith.constant 0 : index
    %215 = vector.load %arg5[%c1_101, %c0_102, %c0_103] : memref<3x32x32xf32, #tpu.memory_space<vmem>>, vector<1x32x32xf32>
    %216 = vector.shape_cast %215 : vector<1x32x32xf32> to vector<32x32xf32>
    %cst_104 = arith.constant dense<0.000000e+00> : vector<29x32xf32>
    %217 = tpu.matmul %214, %216, %cst_104 {dimension_numbers = #tpu.dot_dimension_numbers<[1], [0], [0], [1], [0, 0, 1, 1], [], []>} : vector<29x32xf32>, vector<32x32xf32>, vector<29x32xf32> -> vector<29x32xf32>
    %218 = arith.addf %213, %217 : vector<29x32xf32>
    %219 = vector.extract_strided_slice %206 {offsets = [2, 0], sizes = [29, 32], strides = [1, 1]} : vector<31x32xf32> to vector<29x32xf32>
    %c2_105 = arith.constant 2 : index
    %c0_106 = arith.constant 0 : index
    %c0_107 = arith.constant 0 : index
    %220 = vector.load %arg5[%c2_105, %c0_106, %c0_107] : memref<3x32x32xf32, #tpu.memory_space<vmem>>, vector<1x32x32xf32>
    %221 = vector.shape_cast %220 : vector<1x32x32xf32> to vector<32x32xf32>
    %cst_108 = arith.constant dense<0.000000e+00> : vector<29x32xf32>
    %222 = tpu.matmul %219, %221, %cst_108 {dimension_numbers = #tpu.dot_dimension_numbers<[1], [0], [0], [1], [0, 0, 1, 1], [], []>} : vector<29x32xf32>, vector<32x32xf32>, vector<29x32xf32> -> vector<29x32xf32>
    %223 = arith.addf %218, %222 : vector<29x32xf32>
    %c0_109 = arith.constant 0 : index
    %c0_110 = arith.constant 0 : index
    %224 = vector.load %arg21[%c0_109, %c0_110] : memref<29x32xf32, #tpu.memory_space<vmem>>, vector<29x32xf32>
    tpu.vector_store %arg21[%c0_109, %c0_110], %223 {strides = array<i32>} : memref<29x32xf32, #tpu.memory_space<vmem>>, vector<29x32xf32>,
    %c0_111 = arith.constant 0 : index
    %c0_112 = arith.constant 0 : index
    %225 = tpu.strided_load %arg21[%c0_111, %c0_112] {strides = array<i32: 2, 1>} : memref<29x32xf32, #tpu.memory_space<vmem>>, vector<14x32xf32>
    %c1_113 = arith.constant 1 : index
    %c0_114 = arith.constant 0 : index
    %226 = tpu.strided_load %arg21[%c1_113, %c0_114] {strides = array<i32: 2, 1>} : memref<29x32xf32, #tpu.memory_space<vmem>>, vector<14x32xf32>
    %227 = arith.maximumf %225, %226 : vector<14x32xf32>
    %228 = arith.negf %227 : vector<14x32xf32>
    %229 = math.exp %228 : vector<14x32xf32>
    %cst_115 = arith.constant 1.000000e+00 : f32
    %230 = vector.broadcast %cst_115 : f32 to vector<14x32xf32>
    %231 = arith.addf %230, %229 : vector<14x32xf32>
    %232 = arith.divf %230, %231 : vector<14x32xf32>
    %233 = arith.mulf %227, %232 : vector<14x32xf32>
    %c0_116 = arith.constant 0 : index
    %c0_117 = arith.constant 0 : index
    %234 = vector.load %arg8[%c0_116, %c0_117] : memref<1x32xf32, #tpu.memory_space<vmem>>, vector<1x32xf32>
    %235 = vector.extract_strided_slice %233 {offsets = [0, 0], sizes = [12, 32], strides = [1, 1]} : vector<14x32xf32> to vector<12x32xf32>
    %c0_118 = arith.constant 0 : index
    %c0_119 = arith.constant 0 : index
    %c0_120 = arith.constant 0 : index
    %236 = vector.load %arg7[%c0_118, %c0_119, %c0_120] : memref<3x32x32xf32, #tpu.memory_space<vmem>>, vector<1x32x32xf32>
    %237 = vector.shape_cast %236 : vector<1x32x32xf32> to vector<32x32xf32>
    %cst_121 = arith.constant dense<0.000000e+00> : vector<12x32xf32>
    %238 = tpu.matmul %235, %237, %cst_121 {dimension_numbers = #tpu.dot_dimension_numbers<[1], [0], [0], [1], [0, 0, 1, 1], [], []>} : vector<12x32xf32>, vector<32x32xf32>, vector<12x32xf32> -> vector<12x32xf32>
    %239 = vector.broadcast %234 : vector<1x32xf32> to vector<12x32xf32>
    %240 = arith.addf %239, %238 : vector<12x32xf32>
    %241 = vector.extract_strided_slice %233 {offsets = [1, 0], sizes = [12, 32], strides = [1, 1]} : vector<14x32xf32> to vector<12x32xf32>
    %c1_122 = arith.constant 1 : index
    %c0_123 = arith.constant 0 : index
    %c0_124 = arith.constant 0 : index
    %242 = vector.load %arg7[%c1_122, %c0_123, %c0_124] : memref<3x32x32xf32, #tpu.memory_space<vmem>>, vector<1x32x32xf32>
    %243 = vector.shape_cast %242 : vector<1x32x32xf32> to vector<32x32xf32>
    %cst_125 = arith.constant dense<0.000000e+00> : vector<12x32xf32>
    %244 = tpu.matmul %241, %243, %cst_125 {dimension_numbers = #tpu.dot_dimension_numbers<[1], [0], [0], [1], [0, 0, 1, 1], [], []>} : vector<12x32xf32>, vector<32x32xf32>, vector<12x32xf32> -> vector<12x32xf32>
    %245 = arith.addf %240, %244 : vector<12x32xf32>
    %246 = vector.extract_strided_slice %233 {offsets = [2, 0], sizes = [12, 32], strides = [1, 1]} : vector<14x32xf32> to vector<12x32xf32>
    %c2_126 = arith.constant 2 : index
    %c0_127 = arith.constant 0 : index
    %c0_128 = arith.constant 0 : index
    %247 = vector.load %arg7[%c2_126, %c0_127, %c0_128] : memref<3x32x32xf32, #tpu.memory_space<vmem>>, vector<1x32x32xf32>
    %248 = vector.shape_cast %247 : vector<1x32x32xf32> to vector<32x32xf32>
    %cst_129 = arith.constant dense<0.000000e+00> : vector<12x32xf32>
    %249 = tpu.matmul %246, %248, %cst_129 {dimension_numbers = #tpu.dot_dimension_numbers<[1], [0], [0], [1], [0, 0, 1, 1], [], []>} : vector<12x32xf32>, vector<32x32xf32>, vector<12x32xf32> -> vector<12x32xf32>
    %250 = arith.addf %245, %249 : vector<12x32xf32>
    %c0_130 = arith.constant 0 : index
    %c0_131 = arith.constant 0 : index
    %251 = vector.load %arg22[%c0_130, %c0_131] : memref<12x32xf32, #tpu.memory_space<vmem>>, vector<12x32xf32>
    tpu.vector_store %arg22[%c0_130, %c0_131], %250 {strides = array<i32>} : memref<12x32xf32, #tpu.memory_space<vmem>>, vector<12x32xf32>,
    %c0_132 = arith.constant 0 : index
    %c0_133 = arith.constant 0 : index
    %252 = tpu.strided_load %arg22[%c0_132, %c0_133] {strides = array<i32: 2, 1>} : memref<12x32xf32, #tpu.memory_space<vmem>>, vector<6x32xf32>
    %c1_134 = arith.constant 1 : index
    %c0_135 = arith.constant 0 : index
    %253 = tpu.strided_load %arg22[%c1_134, %c0_135] {strides = array<i32: 2, 1>} : memref<12x32xf32, #tpu.memory_space<vmem>>, vector<6x32xf32>
    %254 = arith.maximumf %252, %253 : vector<6x32xf32>
    %255 = arith.negf %254 : vector<6x32xf32>
    %256 = math.exp %255 : vector<6x32xf32>
    %cst_136 = arith.constant 1.000000e+00 : f32
    %257 = vector.broadcast %cst_136 : f32 to vector<6x32xf32>
    %258 = arith.addf %257, %256 : vector<6x32xf32>
    %259 = arith.divf %257, %258 : vector<6x32xf32>
    %260 = arith.mulf %254, %259 : vector<6x32xf32>
    %c0_137 = arith.constant 0 : index
    %c0_138 = arith.constant 0 : index
    %261 = vector.load %arg10[%c0_137, %c0_138] : memref<1x16xf32, #tpu.memory_space<vmem>>, vector<1x16xf32>
    %262 = vector.extract_strided_slice %260 {offsets = [0, 0], sizes = [4, 32], strides = [1, 1]} : vector<6x32xf32> to vector<4x32xf32>
    %c0_139 = arith.constant 0 : index
    %c0_140 = arith.constant 0 : index
    %c0_141 = arith.constant 0 : index
    %263 = vector.load %arg9[%c0_139, %c0_140, %c0_141] : memref<3x32x16xf32, #tpu.memory_space<vmem>>, vector<1x32x16xf32>
    %264 = vector.shape_cast %263 : vector<1x32x16xf32> to vector<32x16xf32>
    %cst_142 = arith.constant dense<0.000000e+00> : vector<4x16xf32>
    %265 = tpu.matmul %262, %264, %cst_142 {dimension_numbers = #tpu.dot_dimension_numbers<[1], [0], [0], [1], [0, 0, 1, 1], [], []>} : vector<4x32xf32>, vector<32x16xf32>, vector<4x16xf32> -> vector<4x16xf32>
    %266 = vector.broadcast %261 : vector<1x16xf32> to vector<4x16xf32>
    %267 = arith.addf %266, %265 : vector<4x16xf32>
    %268 = vector.extract_strided_slice %260 {offsets = [1, 0], sizes = [4, 32], strides = [1, 1]} : vector<6x32xf32> to vector<4x32xf32>
    %c1_143 = arith.constant 1 : index
    %c0_144 = arith.constant 0 : index
    %c0_145 = arith.constant 0 : index
    %269 = vector.load %arg9[%c1_143, %c0_144, %c0_145] : memref<3x32x16xf32, #tpu.memory_space<vmem>>, vector<1x32x16xf32>
    %270 = vector.shape_cast %269 : vector<1x32x16xf32> to vector<32x16xf32>
    %cst_146 = arith.constant dense<0.000000e+00> : vector<4x16xf32>
    %271 = tpu.matmul %268, %270, %cst_146 {dimension_numbers = #tpu.dot_dimension_numbers<[1], [0], [0], [1], [0, 0, 1, 1], [], []>} : vector<4x32xf32>, vector<32x16xf32>, vector<4x16xf32> -> vector<4x16xf32>
    %272 = arith.addf %267, %271 : vector<4x16xf32>
    %273 = vector.extract_strided_slice %260 {offsets = [2, 0], sizes = [4, 32], strides = [1, 1]} : vector<6x32xf32> to vector<4x32xf32>
    %c2_147 = arith.constant 2 : index
    %c0_148 = arith.constant 0 : index
    %c0_149 = arith.constant 0 : index
    %274 = vector.load %arg9[%c2_147, %c0_148, %c0_149] : memref<3x32x16xf32, #tpu.memory_space<vmem>>, vector<1x32x16xf32>
    %275 = vector.shape_cast %274 : vector<1x32x16xf32> to vector<32x16xf32>
    %cst_150 = arith.constant dense<0.000000e+00> : vector<4x16xf32>
    %276 = tpu.matmul %273, %275, %cst_150 {dimension_numbers = #tpu.dot_dimension_numbers<[1], [0], [0], [1], [0, 0, 1, 1], [], []>} : vector<4x32xf32>, vector<32x16xf32>, vector<4x16xf32> -> vector<4x16xf32>
    %277 = arith.addf %272, %276 : vector<4x16xf32>
    %cst_151 = arith.constant dense<0.000000e+00> : vector<16xf32>
    %278 = vector.multi_reduction <add>, %277, %cst_151 [0] : vector<4x16xf32> to vector<16xf32>
    %279 = vector.shape_cast %278 : vector<16xf32> to vector<1x16xf32>
    %cst_152 = arith.constant 4.000000e+00 : f32
    %280 = vector.broadcast %cst_152 : f32 to vector<1x16xf32>
    %281 = arith.divf %279, %280 : vector<1x16xf32>
    %c1_153 = arith.constant 1 : index
    %c0_154 = arith.constant 0 : index
    %282 = vector.load %arg16[%c1_153, %c0_154] : memref<2x16xf32, #tpu.memory_space<vmem>>, vector<1x16xf32>
    tpu.vector_store %arg16[%c1_153, %c0_154], %281 {strides = array<i32>} : memref<2x16xf32, #tpu.memory_space<vmem>>, vector<1x16xf32>,
    %c0_155 = arith.constant 0 : index
    %c0_156 = arith.constant 0 : index
    %283 = vector.load %arg16[%c0_155, %c0_156] : memref<2x16xf32, #tpu.memory_space<vmem>>, vector<2x16xf32>
    %c0_157 = arith.constant 0 : index
    %c0_158 = arith.constant 0 : index
    %284 = vector.load %arg11[%c0_157, %c0_158] : memref<16x16xf32, #tpu.memory_space<vmem>>, vector<16x16xf32>
    %cst_159 = arith.constant dense<0.000000e+00> : vector<2x16xf32>
    %285 = tpu.matmul %283, %284, %cst_159 {dimension_numbers = #tpu.dot_dimension_numbers<[1], [0], [0], [1], [0, 0, 1, 1], [], []>} : vector<2x16xf32>, vector<16x16xf32>, vector<2x16xf32> -> vector<2x16xf32>
    %c0_160 = arith.constant 0 : index
    %c0_161 = arith.constant 0 : index
    %286 = vector.load %arg12[%c0_160, %c0_161] : memref<1x16xf32, #tpu.memory_space<vmem>>, vector<1x16xf32>
    %287 = vector.broadcast %286 : vector<1x16xf32> to vector<2x16xf32>
    %288 = arith.addf %285, %287 : vector<2x16xf32>
    %c0_162 = arith.constant 0 : index
    %c0_163 = arith.constant 0 : index
    %289 = vector.load %arg13[%c0_162, %c0_163] : memref<16x16xf32, #tpu.memory_space<vmem>>, vector<16x16xf32>
    %cst_164 = arith.constant dense<0.000000e+00> : vector<2x16xf32>
    %290 = tpu.matmul %283, %289, %cst_164 {dimension_numbers = #tpu.dot_dimension_numbers<[1], [0], [0], [1], [0, 0, 1, 1], [], []>} : vector<2x16xf32>, vector<16x16xf32>, vector<2x16xf32> -> vector<2x16xf32>
    %c0_165 = arith.constant 0 : index
    %c0_166 = arith.constant 0 : index
    %291 = vector.load %arg14[%c0_165, %c0_166] : memref<1x16xf32, #tpu.memory_space<vmem>>, vector<1x16xf32>
    %292 = vector.broadcast %291 : vector<1x16xf32> to vector<2x16xf32>
    %293 = arith.addf %290, %292 : vector<2x16xf32>
    %cst_167 = arith.constant 0.000000e+00 : f32
    %294 = vector.broadcast %cst_167 : f32 to vector<2x16xf32>
    %295 = arith.maximumf %293, %294 : vector<2x16xf32>
    %296 = vector.broadcast %cst_167 : f32 to vector<2x16xf32>
    %297 = arith.subf %293, %296 : vector<2x16xf32>
    %298 = arith.cmpf one, %297, %297 : vector<2x16xf32>
    %299 = vector.broadcast %cst_167 : f32 to vector<2x16xf32>
    %300 = arith.addf %293, %299 : vector<2x16xf32>
    %301 = math.absf %297 : vector<2x16xf32>
    %cst_168 = arith.constant 0.000000e+00 : f32
    %302 = vector.broadcast %cst_168 : f32 to vector<2x16xf32>
    %303 = arith.subf %302, %301 : vector<2x16xf32>
    %304 = math.exp %303 : vector<2x16xf32>
    %305 = math.log1p %304 : vector<2x16xf32>
    %306 = arith.addf %295, %305 : vector<2x16xf32>
    %307 = arith.select %298, %300, %306 : vector<2x16xi1>, vector<2x16xf32>
    %c0_169 = arith.constant 0 : index
    %c0_170 = arith.constant 0 : index
    %308 = vector.load %arg18[%c0_169, %c0_170] : memref<2x16xf32, #tpu.memory_space<vmem>>, vector<2x16xf32>
    tpu.vector_store %arg18[%c0_169, %c0_170], %288 {strides = array<i32>} : memref<2x16xf32, #tpu.memory_space<vmem>>, vector<2x16xf32>,
    %c0_171 = arith.constant 0 : index
    %c0_172 = arith.constant 0 : index
    %309 = vector.load %arg19[%c0_171, %c0_172] : memref<2x16xf32, #tpu.memory_space<vmem>>, vector<2x16xf32>
    tpu.vector_store %arg19[%c0_171, %c0_172], %307 {strides = array<i32>} : memref<2x16xf32, #tpu.memory_space<vmem>>, vector<2x16xf32>,
    %c0_173 = arith.constant 0 : index
    %c0_174 = arith.constant 0 : index
    %310 = vector.load %arg15[%c0_173, %c0_174] : memref<2x16xf32, #tpu.memory_space<vmem>>, vector<2x16xf32>
    %311 = arith.mulf %307, %310 : vector<2x16xf32>
    %312 = arith.addf %288, %311 : vector<2x16xf32>
    %c0_175 = arith.constant 0 : index
    %c0_176 = arith.constant 0 : index
    %313 = vector.load %arg17[%c0_175, %c0_176] : memref<2x16xf32, #tpu.memory_space<vmem>>, vector<2x16xf32>
    tpu.vector_store %arg17[%c0_175, %c0_176], %312 {strides = array<i32>} : memref<2x16xf32, #tpu.memory_space<vmem>>, vector<2x16xf32>,
    return
  }
}

</mosaic_0001>

<bundles_post_ra>
// kernel: conv_encoder_forward.1
= control target key start
LH: loop header
LB: loop body
LE: loop exit
PB: predicated region body
PF: predicated region fallthrough
CT: control target
= control target key end

     0   :  { %s3458_s0 = inlined_call_operand.vmem [shape: f32[2,64,1], index: 0, kind: input, shape index: {}]   ;;  %s3459_s1 = inlined_call_operand.vmem [shape: f32[2,64,1], index: 1, kind: input, shape index: {}]   ;;  %s3460_s2 = inlined_call_operand.vmem [shape: f32[2,3], index: 2, kind: input, shape index: {}]   ;;  %s3461_s3 = inlined_call_operand.vmem [shape: f32[3,5,32], index: 3, kind: input, shape index: {}]   ;;  %s3462_s4 = inlined_call_operand.vmem [shape: f32[1,32], index: 4, kind: input, shape index: {}]   ;;  %s3463_s5 = inlined_call_operand.hbm [shape: f32[3,32,32], index: 5, kind: input, shape index: {}]   ;;  %s3464_s6 = inlined_call_operand.vmem [shape: f32[1,32], index: 6, kind: input, shape index: {}]   ;;  %s3465_s7 = inlined_call_operand.vmem [shape: f32[3,32,32], index: 7, kind: input, shape index: {}]   ;;  %s3466_s8 = inlined_call_operand.vmem [shape: f32[1,32], index: 8, kind: input, shape index: {}]   ;;  %s3467_s9 = inlined_call_operand.vmem [shape: f32[3,32,16], index: 9, kind: input, shape index: {}]   ;;  %s3468_s10 = inlined_call_operand.vmem [shape: f32[1,16], index: 10, kind: input, shape index: {}]   ;;  %s3469_s11 = inlined_call_operand.vmem [shape: f32[16,16], index: 11, kind: input, shape index: {}]   ;;  %s3470_s12 = inlined_call_operand.vmem [shape: f32[1,16], index: 12, kind: input, shape index: {}]   ;;  %s3471_s13 = inlined_call_operand.vmem [shape: f32[16,16], index: 13, kind: input, shape index: {}]   ;;  %s3472_s14 = inlined_call_operand.vmem [shape: f32[1,16], index: 14, kind: input, shape index: {}]   ;;  %s3473_s15 = inlined_call_operand.vmem [shape: f32[2,16], index: 15, kind: input, shape index: {}]   ;;  %s3474_s16 = inlined_call_operand.hbm [shape: f32[2,16], index: 16, kind: output, shape index: {0}]   ;;  %s3475_s17 = inlined_call_operand.hbm [shape: f32[2,16], index: 17, kind: output, shape index: {1}]   ;;  %s3476_s18 = inlined_call_operand.hbm [shape: f32[2,16], index: 18, kind: output, shape index: {2}]   ;;  %s3477_s19 = inlined_call_operand.hbm [shape: f32[2,16], index: 19, kind: output, shape index: {3}]  }
   0x1   :  { %3492 = sst [smem:[#allocation26_spill]] %s3458_s0 }
   0x2   :  { %3493 = sst [smem:[#allocation27_spill]] %s3459_s1 }
   0x3   :  { %3494 = sst [smem:[#allocation28_spill]] %s3460_s2 }
   0x4   :  { %3495 = sst [smem:[#allocation29_spill]] %s3461_s3 }
   0x5   :  { %25 = vsyncpa [#allocation6], 0 }
   0x6   :  { %26 = vsyncpa [#allocation7], 0 }
   0x7   :  { %27 = vsyncpa [#allocation10], 0 }
   0x8   :  { %28 = vsyncpa [#allocation13], 0  ;;  %s43_s20 = sshll.u32 %s3463_s5, 4  ;;  %s2357_s21 = smov [#allocation5]   ;;  %s44_s20 = int_to_ptr.hbm [resolvable:$true] %s43_s20 }
   0x9   :  { %s45_s1 = sshll.u32 %s2357_s21, 4  ;;  %s2358_s22 = smov 128   ;;  %s46_s1 = int_to_ptr.vmem [resolvable:$true] %s45_s1 }
   0xa   :  { %s2359_s2 = smov 8  }
   0xb   :  { %51 = dma.hbm_to_vmem [thread:$0]  %s44_s20, 1536, %s46_s1, [#allocation6], %s2358_s22, %s2358_s22, %s2359_s2  }
   0xc   :  { %2349 = dma.done.wait [#allocation6], 1536  }
   0xd   :  { %2350 = vsyncadd [#allocation6], 4294965760  ;;  %v2360_v0 = vmov 0   ;;  %s3496_s25 = sld [smem:[#allocation26_spill]]  ;;  %vm105_vm0 = vcmask 1042432   ;;  %vm101_vm1 = vcmask 23552  }
   0xe   :  { %2158 = vset.pattern.permute.xlu2 %v2360_v0  ;;  %2157 = vset.pattern.permute.xlu1 %v2360_v0  ;;  %s3497_s0 = sld [smem:[#allocation29_spill]]  ;;  %vm260_vm2 = vcmask 1046528   ;;  %vm357_vm3 = vcmask 1045504   ;;  %vm437_vm4 = vcmask 261120   ;;  %vm445_vm5 = vcmask 259072   ;;  %s2364_s27 = smov [#allocation9]  }
   0xf   :  { %2156 = vset.pattern.permute.xlu0 %v2360_v0  ;;  %s3498_s23 = sld [smem:[#allocation28_spill]]  ;;  %s1991_s29 = sshll.u32 %s3475_s17, 4  ;;  %s1992_s29 = int_to_ptr.hbm [resolvable:$true] %s1991_s29 }
  0x10   :  { %s3499_s26 = sld [smem:[#allocation27_spill]]  ;;  %s2002_s30 = sshll.u32 %s3476_s18, 4  ;;  %s2003_s30 = int_to_ptr.hbm [resolvable:$true] %s2002_s30 }
  0x13   :  { %v85_v1 = vld [vmem:[%s3496_s25 + $0x20] sm:$0xff]  ;;  %v83_v2 = vld [vmem:[%s3496_s25 + $0x10] sm:$0xff]  ;;  %v84_v12 = vld [vmem:[%s3496_s25 + $0x18] sm:$0xff] }
  0x14   :  { %v81_v3 = vld [vmem:[%s3496_s25] sm:$0xff]  ;;  %150 = vperm.xlu2 %2158, %v85_v1   ;;  %140 = vperm.xlu1 %2157, %v83_v2   ;;  %v2486_v5 = vld [vmem:[%s3497_s0 + $0x8] sm:$0x1f]  ;;  %v2491_v6 = vld [vmem:[%s3497_s0 + $0x10] sm:$0x1f] }
  0x15   :  { %v2481_v4 = vld [vmem:[%s3497_s0] sm:$0x1f]  ;;  %130 = vperm.xlu0 %2156, %v81_v3   ;;  %v82_v13 = vld [vmem:[%s3496_s25 + $0x8] sm:$0xff]  ;;  %v87_v17 = vld [vmem:[%s3496_s25 + $0x30] sm:$0xff]  ;;  %v2594_v45 = vperm.slane %v2486_v5, 1  ;;  %v2597_v46 = vperm.slane %v2491_v6, 1 }
  0x16   :  { %v79_v7 = vadd.f32 %v2486_v5, %v2481_v4  ;;  %v97_v9 = vld [vmem:[%s3498_s23] sm:$0x1]  ;;  %v92_v14 = vld [vmem:[%s3499_s26 + $0x18] sm:$0xff]  ;;  %v91_v15 = vld [vmem:[%s3499_s26 + $0x10] sm:$0xff]  ;;  %v2600_v48 = vperm.slane %v2486_v5, 0  ;;  %v2603_v49 = vperm.slane %v2491_v6, 0 }
  0x17   :  { %v89_v11 = vld [vmem:[%s3499_s26] sm:$0xff]  ;;  %v90_v16 = vld [vmem:[%s3499_s26 + $0x8] sm:$0xff]  ;;  %v88_v20 = vld [vmem:[%s3496_s25 + $0x38] sm:$0xff]  ;;  %v2612_v54 = vperm.slane %v2481_v4, 1  ;;  %v2621_v57 = vperm.slane %v2481_v4, 0 }
  0x18   :  { %v2496_v8 = vadd.f32 %v79_v7, %v2491_v6  ;;  %v86_v18 = vld [vmem:[%s3496_s25 + $0x28] sm:$0xff]  ;;  %v93_v19 = vld [vmem:[%s3499_s26 + $0x20] sm:$0xff]  ;;  %v95_v21 = vld [vmem:[%s3499_s26 + $0x30] sm:$0xff] }
  0x19   :  { %v94_v22 = vld [vmem:[%s3499_s26 + $0x28] sm:$0xff]  ;;  %v2083_v24 = vld [vmem:[%s3496_s25 + $0x40] sm:$0xff]  ;;  %v96_v25 = vld [vmem:[%s3499_s26 + $0x38] sm:$0xff] }
  0x1a   :  { %v3482_v10 = vrot.slane %v2496_v8, 2  ;;  %v2084_v23 = vld [vmem:[%s3496_s25 + $0x48] sm:$0xff]  ;;  %v2091_v27 = vld [vmem:[%s3499_s26 + $0x40] sm:$0xff]  ;;  %v2085_v28 = vld [vmem:[%s3496_s25 + $0x50] sm:$0xff] }
  0x1b   :  { %v2092_v26 = vld [vmem:[%s3499_s26 + $0x48] sm:$0xff]  ;;  %v2087_v29 = vld [vmem:[%s3496_s25 + $0x60] sm:$0xff]  ;;  %v2086_v30 = vld [vmem:[%s3496_s25 + $0x58] sm:$0xff] }
  0x1c   :  { %2037 = vmatpush.msk.msra.mxu0 %vm105_vm0, %v3482_v10  ;;  %188 = vperm.xlu2 %2158, %v89_v11   ;;  %v2093_v31 = vld [vmem:[%s3499_s26 + $0x50] sm:$0xff]  ;;  %v2088_v32 = vld [vmem:[%s3496_s25 + $0x68] sm:$0xff]  ;;  %v2095_v33 = vld [vmem:[%s3499_s26 + $0x60] sm:$0xff] }
  0x1d   :  { %2038 = vmatmul.msk.f32.vlgmr.msra.gmra.mxu0 %vm101_vm1, %v97_v9  ;;  %145 = vperm.xlu1 %2157, %v84_v12   ;;  %v2094_v34 = vld [vmem:[%s3499_s26 + $0x58] sm:$0xff]  ;;  %v2097_v35 = vld [vmem:[%s3499_s26 + $0x70] sm:$0xff]  ;;  %v2096_v36 = vld [vmem:[%s3499_s26 + $0x68] sm:$0xff] }
  0x1e   :  { %135 = vperm.xlu0 %2156, %v82_v13   ;;  %v2089_v37 = vld [vmem:[%s3496_s25 + $0x70] sm:$0xff]  ;;  %v2098_v38 = vld [vmem:[%s3499_s26 + $0x78] sm:$0xff] }
  0x1f   :  { %v2090_v39 = vld [vmem:[%s3496_s25 + $0x78] sm:$0xff] }
  0x24   :  { %203 = vperm.xlu2 %2158, %v92_v14  }
  0x25   :  { %198 = vperm.xlu1 %2157, %v91_v15  }
  0x26   :  { %193 = vperm.xlu0 %2156, %v90_v16  }
  0x2c   :  { %160 = vperm.xlu2 %2158, %v87_v17  }
  0x2d   :  { %155 = vperm.xlu1 %2157, %v86_v18  }
  0x2e   :  { %208 = vperm.xlu0 %2156, %v93_v19  }
  0x34   :  { %165 = vperm.xlu2 %2158, %v88_v20   ;;  %v98_v20 = vld [vmem:[%s3462_s4] sm:$0x1] }
  0x35   :  { %218 = vperm.xlu1 %2157, %v95_v21  }
  0x36   :  { %213 = vperm.xlu0 %2156, %v94_v22  }
  0x3c   :  { %1057 = vperm.xlu2 %2158, %v2084_v23  }
  0x3d   :  { %1052 = vperm.xlu1 %2157, %v2083_v24  }
  0x3e   :  { %223 = vperm.xlu0 %2156, %v96_v25  }
  0x44   :  { %1114 = vperm.xlu2 %2158, %v2092_v26  }
  0x45   :  { %1109 = vperm.xlu1 %2157, %v2091_v27  }
  0x46   :  { %1062 = vperm.xlu0 %2156, %v2085_v28  }
  0x4c   :  { %1072 = vperm.xlu2 %2158, %v2087_v29  }
  0x4d   :  { %1067 = vperm.xlu1 %2157, %v2086_v30  }
  0x4e   :  { %1119 = vperm.xlu0 %2156, %v2093_v31  }
  0x54   :  { %1077 = vperm.xlu2 %2158, %v2088_v32  }
  0x55   :  { %1129 = vperm.xlu1 %2157, %v2095_v33  }
  0x56   :  { %1124 = vperm.xlu0 %2156, %v2094_v34  }
  0x5c   :  { %1139 = vperm.xlu2 %2158, %v2097_v35  }
  0x5d   :  { %1134 = vperm.xlu1 %2157, %v2096_v36  }
  0x5e   :  { %1082 = vperm.xlu0 %2156, %v2089_v37  }
  0x65   :  { %1144 = vperm.xlu1 %2157, %v2098_v38  }
  0x66   :  { %1087 = vperm.xlu0 %2156, %v2090_v39  }
  0x6e   :  { %v151_v40 = vpop.permute.xlu2 %150 }
  0x6f   :  { %v2606_v50 = vmul.f32 %v2600_v48, %v151_v40  ;;  %v2609_v51 = vmul.f32 %v2603_v49, %v151_v40  ;;  %v2630_v60 = vmul.f32 %v2621_v57, %v151_v40 }
  0x71   :  { %v268_v61 = vrot.slane %v2606_v50, 1  ;;  %v365_v62 = vrot.slane %v2609_v51, 2 }
  0x76   :  { %v189_v41 = vpop.permute.xlu2 %188 }
  0x77   :  { %v2615_v55 = vmul.f32 %v2594_v45, %v189_v41  ;;  %v2618_v56 = vmul.f32 %v2597_v46, %v189_v41  ;;  %v227_v63 = vmul.f32 %v2612_v54, %v189_v41 }
  0x79   :  { %v309_v0 = vrot.slane %v2615_v55, 1  ;;  %v406_v1 = vrot.slane %v2618_v56, 2 }
  0x7e   :  { %v204_v42 = vpop.permute.xlu2 %203 }
  0x7f   :  { %v2624_v58 = vmul.f32 %v2594_v45, %v204_v42  ;;  %v2627_v59 = vmul.f32 %v2597_v46, %v204_v42  ;;  %v2643_v7 = vmul.f32 %v2612_v54, %v204_v42 }
  0x81   :  { %v314_v9 = vrot.slane %v2624_v58, 1  ;;  %v411_v11 = vrot.slane %v2627_v59, 2 }
  0x86   :  { %v141_v43 = vpop.permute.xlu1 %140  ;;  %v161_v47 = vpop.permute.xlu2 %160 }
  0x87   :  { %v131_v44 = vpop.permute.xlu0 %130  ;;  %v246_v3 = vmul.f32 %v2600_v48, %v141_v43  ;;  %v343_v4 = vmul.f32 %v2603_v49, %v141_v43  ;;  %v2648_v12 = vmul.f32 %v2621_v57, %v161_v47  ;;  %v2653_v14 = vmul.f32 %v2600_v48, %v161_v47 }
  0x88   :  { %v244_v5 = vmul.f32 %v2600_v48, %v131_v44  ;;  %v341_v6 = vmul.f32 %v2603_v49, %v131_v44  ;;  %v2656_v15 = vmul.f32 %v2603_v49, %v161_v47  ;;  %v171_v21 = vmul.f32 %v2621_v57, %v141_v43 }
  0x89   :  { %v169_v22 = vmul.f32 %v2621_v57, %v131_v44  ;;  %v264_v25 = vrot.slane %v246_v3, 1  ;;  %v361_v26 = vrot.slane %v343_v4, 2 }
  0x8a   :  { %v261_v27 = vrot.slane %v244_v5, 1  ;;  %v358_v28 = vrot.slane %v341_v6, 2 }
  0x8e   :  { %v2650_v13 = vpop.permute.xlu2 %165 }
  0x8f   :  { %v146_v52 = vpop.permute.xlu1 %145  ;;  %v2670_v30 = vmul.f32 %v2600_v48, %v2650_v13 }
  0x90   :  { %v136_v53 = vpop.permute.xlu0 %135  ;;  %v247_v2 = vmul.f32 %v2600_v48, %v146_v52  ;;  %v2659_v16 = vmul.f32 %v2603_v49, %v146_v52  ;;  %v172_v31 = vmul.f32 %v2621_v57, %v146_v52 }
  0x91   :  { %v245_v17 = vmul.f32 %v2600_v48, %v136_v53  ;;  %v342_v24 = vmul.f32 %v2603_v49, %v136_v53  ;;  %v170_v35 = vmul.f32 %v2621_v57, %v136_v53 }
  0x92   :  { %v266_v23 = vrot.slane %v247_v2, 1  ;;  %v363_v34 = vrot.slane %v2659_v16, 2 }
  0x93   :  { %v262_v36 = vrot.slane %v245_v17, 1  ;;  %v359_v40 = vrot.slane %v342_v24, 2 }
  0x94   :  { %v267_v38 = vsel %vm260_vm2, %v264_v25, %v266_v23  ;;  %v269_v39 = vsel %vm260_vm2, %v266_v23, %v268_v61  ;;  %v364_v4 = vsel %vm357_vm3, %v361_v26, %v363_v34 }
  0x95   :  { %v263_v5 = vsel %vm260_vm2, %v261_v27, %v262_v36 }
  0x97   :  { %v199_v18 = vpop.permute.xlu1 %198 }
  0x98   :  { %v194_v19 = vpop.permute.xlu0 %193  ;;  %v295_v32 = vmul.f32 %v2594_v45, %v199_v18  ;;  %v229_v42 = vmul.f32 %v2612_v54, %v199_v18  ;;  %v392_v43 = vmul.f32 %v2597_v46, %v199_v18 }
  0x99   :  { %v294_v37 = vmul.f32 %v2594_v45, %v194_v19  ;;  %v228_v44 = vmul.f32 %v2612_v54, %v194_v19  ;;  %v391_v47 = vmul.f32 %v2597_v46, %v194_v19  ;;  %v265_v19 = vsel %vm260_vm2, %v262_v36, %v264_v25 }
  0x9a   :  { %v125_v29 = vpop.f32.mrf.mxu0  ;;  %v312_v52 = vrot.slane %v295_v32, 1  ;;  %v409_v32 = vrot.slane %v392_v43, 2 }
  0x9b   :  { %v126_v33 = vadd.f32 %v125_v29, %v98_v20  ;;  %v310_v6 = vrot.slane %v294_v37, 1  ;;  %v360_v29 = vsel %vm357_vm3, %v358_v28, %v359_v40 }
  0x9c   :  { %v315_v27 = vsel %vm260_vm2, %v312_v52, %v314_v9 }
  0x9d   :  { %v2681_v41 = vperm.slane %v126_v33, 0  ;;  %v407_v33 = vrot.slane %v391_v47, 2  ;;  %v311_v25 = vsel %vm260_vm2, %v309_v0, %v310_v6 }
  0x9f   :  { %v178_v53 = vadd.f32 %v2681_v41, %v169_v22  ;;  %v179_v2 = vadd.f32 %v2681_v41, %v170_v35  ;;  %v180_v3 = vadd.f32 %v2681_v41, %v171_v21  ;;  %v156_v17 = vpop.permute.xlu1 %155  ;;  %v181_v20 = vadd.f32 %v2681_v41, %v172_v31 }
  0xa0   :  { %v209_v18 = vpop.permute.xlu0 %208  ;;  %v362_v21 = vsel %vm357_vm3, %v359_v40, %v361_v26  ;;  %v249_v31 = vmul.f32 %v2600_v48, %v156_v17  ;;  %v408_v55 = vsel %vm357_vm3, %v406_v1, %v407_v33  ;;  %v410_v0 = vsel %vm357_vm3, %v407_v33, %v409_v32 }
  0xa1   :  { %v235_v23 = vadd.f32 %v227_v63, %v178_v53  ;;  %v236_v22 = vadd.f32 %v228_v44, %v179_v2  ;;  %v237_v24 = vadd.f32 %v229_v42, %v180_v3  ;;  %v313_v63 = vsel %vm260_vm2, %v310_v6, %v312_v52 }
  0xa2   :  { %v238_v28 = vadd.f32 %v2643_v7, %v181_v20  ;;  %v2708_v42 = vmul.f32 %v2594_v45, %v209_v18  ;;  %v174_v43 = vmul.f32 %v2621_v57, %v156_v17  ;;  %v231_v53 = vmul.f32 %v2612_v54, %v209_v18 }
  0xa3   :  { %v284_v35 = vadd.f32 %v263_v5, %v235_v23  ;;  %v285_v37 = vadd.f32 %v265_v19, %v236_v22  ;;  %v286_v10 = vadd.f32 %v267_v38, %v237_v24  ;;  %v412_v38 = vsel %vm357_vm3, %v409_v32, %v411_v11 }
  0xa4   :  { %v287_v52 = vadd.f32 %v269_v39, %v238_v28  ;;  %v316_v2 = vrot.slane %v2708_v42, 1  ;;  %v2721_v3 = vmul.f32 %v2597_v46, %v209_v18  ;;  %v272_v1 = vrot.slane %v2653_v14, 1  ;;  %v2768_v28 = vld [vmem:[#allocation5 + $0x58] sm:$0xff] }
  0xa5   :  { %v332_v26 = vadd.f32 %v311_v25, %v284_v35  ;;  %v333_v36 = vadd.f32 %v313_v63, %v285_v37  ;;  %v334_v40 = vadd.f32 %v315_v27, %v286_v10  ;;  %v270_v10 = vrot.slane %v249_v31, 1  ;;  %v2758_v35 = vld [vmem:[#allocation5 + $0x18] sm:$0xff]  ;;  %v2764_v63 = vld [vmem:[#allocation5 + $0x10] sm:$0xff]  ;;  %684 = vmatpush.msra.mxu3 %v2768_v28 }
  0xa6   :  { %v274_v23 = vrot.slane %v2670_v30, 1  ;;  %v182_v39 = vadd.f32 %v2681_v41, %v2630_v60  ;;  %v413_v22 = vrot.slane %v2721_v3, 2  ;;  %v366_v14 = vsel %vm357_vm3, %v363_v34, %v365_v62  ;;  %575 = vmatpush.msra.mxu1 %v2758_v35  ;;  %v2766_v31 = vld [vmem:[#allocation5 + $0x38] sm:$0xff] }
  0xa7   :  { %v381_v44 = vadd.f32 %v360_v29, %v332_v26  ;;  %v382_v7 = vadd.f32 %v362_v21, %v333_v36  ;;  %v383_v47 = vadd.f32 %v364_v4, %v334_v40  ;;  %v219_v5 = vpop.permute.xlu1 %218  ;;  %v317_v4 = vsel %vm260_vm2, %v314_v9, %v316_v2  ;;  %631 = vmatpush.msra.mxu2 %v2766_v31 }
  0xa8   :  { %v214_v56 = vpop.permute.xlu0 %213  ;;  %v346_v18 = vmul.f32 %v2603_v49, %v156_v17  ;;  %v335_v24 = vadd.f32 %v317_v4, %v287_v52  ;;  %v2739_v29 = vmul.f32 %v2594_v45, %v219_v5  ;;  %v183_v58 = vadd.f32 %v2681_v41, %v174_v43  ;;  %v2778_v43 = vld [vmem:[#allocation5 + $0x8] sm:$0xff]  ;;  %576 = vmatpush.msra.mxu1 %v2764_v63 }
  0xa9   :  { %v429_v6 = vadd.f32 %v408_v55, %v381_v44  ;;  %v430_v20 = vadd.f32 %v410_v0, %v382_v7  ;;  %v431_v19 = vadd.f32 %v412_v38, %v383_v47  ;;  %v239_v60 = vadd.f32 %v231_v53, %v182_v39 }
  0xaa   :  { %v271_v9 = vsel %vm260_vm2, %v268_v61, %v270_v10  ;;  %v232_v16 = vmul.f32 %v2612_v54, %v214_v56  ;;  %v384_v34 = vadd.f32 %v366_v14, %v335_v24  ;;  %v414_v17 = vsel %vm357_vm3, %v411_v11, %v413_v22  ;;  %577 = vmatpush.msra.mxu1 %v2778_v43  ;;  %v2797_v14 = vld [vmem:[#allocation5] sm:$0xff] }
  0xab   :  { %438 = vst.msk [vmem:[#allocation2] sm:$0xff] %vm437_vm4, %v429_v6  ;;  %v233_v21 = vmul.f32 %v2612_v54, %v219_v5  ;;  %v2753_v32 = vmul.f32 %v2597_v46, %v219_v5  ;;  %v320_v50 = vrot.slane %v2739_v29, 1  ;;  %v298_v61 = vmul.f32 %v2594_v45, %v214_v56 }
  0xac   :  { %439 = vst.msk [vmem:[#allocation2 + $0x8] sm:$0xff] %vm437_vm4, %v430_v20  ;;  %v240_v33 = vadd.f32 %v232_v16, %v183_v58  ;;  %v395_v27 = vmul.f32 %v2597_v46, %v214_v56  ;;  %v367_v37 = vrot.slane %v346_v18, 2  ;;  %v432_v59 = vadd.f32 %v414_v17, %v384_v34  ;;  %v2799_v18 = vld [vmem:[#allocation5 + $0x30] sm:$0xff]  ;;  %578 = vmatpush.msra.mxu1 %v2797_v14 }
  0xad   :  { %440 = vst.msk [vmem:[#allocation2 + $0x10] sm:$0xff] %vm437_vm4, %v431_v19  ;;  %v184_v11 = vadd.f32 %v2681_v41, %v2648_v12  ;;  %v273_v25 = vsel %vm260_vm2, %v270_v10, %v272_v1  ;;  %v369_v26 = vrot.slane %v2656_v15, 2  ;;  %v318_v40 = vrot.slane %v298_v61, 1  ;;  %632 = vmatpush.msra.mxu2 %v2799_v18 }
  0xae   :  { %v289_v36 = vadd.f32 %v273_v25, %v240_v33  ;;  %v176_v12 = vmul.f32 %v2621_v57, %v2650_v13  ;;  %v348_v42 = vmul.f32 %v2603_v49, %v2650_v13  ;;  %v288_v38 = vadd.f32 %v271_v9, %v239_v60  ;;  %441 = vst.msk [vmem:[#allocation2 + $0x18] sm:$0xff] %vm437_vm4, %v432_v59 }
  0xaf   :  { %v241_v55 = vadd.f32 %v233_v21, %v184_v11  ;;  %v417_v15 = vrot.slane %v2753_v32, 2  ;;  %v319_v44 = vsel %vm260_vm2, %v316_v2, %v318_v40  ;;  %v321_v7 = vsel %vm260_vm2, %v318_v40, %v320_v50  ;;  %v2825_v40 = vld [vmem:[#allocation5 + $0x20] sm:$0xff] }
  0xb0   :  { %v224_v0 = vpop.permute.xlu0 %223  ;;  %v415_v47 = vrot.slane %v395_v27, 2  ;;  %v368_v13 = vsel %vm357_vm3, %v365_v62, %v367_v37  ;;  %v275_v52 = vsel %vm260_vm2, %v272_v1, %v274_v23  ;;  %v336_v10 = vadd.f32 %v319_v44, %v288_v38 }
  0xb1   :  { %v337_v53 = vadd.f32 %v321_v7, %v289_v36  ;;  %v370_v3 = vsel %vm357_vm3, %v367_v37, %v369_v26  ;;  %v185_v5 = vadd.f32 %v2681_v41, %v176_v12  ;;  %v234_v2 = vmul.f32 %v2612_v54, %v224_v0  ;;  %v2801_v41 = vld [vmem:[#allocation5 + $0x50] sm:$0xff]  ;;  %v2823_v36 = vld [vmem:[#allocation5 + $0x48] sm:$0xff]  ;;  %v2828_v12 = vld [vmem:[#allocation5 + $0x40] sm:$0xff] }
  0xb2   :  { %v300_v56 = vmul.f32 %v2594_v45, %v224_v0  ;;  %v371_v6 = vrot.slane %v348_v42, 2  ;;  %v290_v51 = vadd.f32 %v275_v52, %v241_v55  ;;  %v385_v20 = vadd.f32 %v368_v13, %v336_v10  ;;  %685 = vmatpush.msra.mxu3 %v2801_v41 }
  0xb3   :  { %v386_v62 = vadd.f32 %v370_v3, %v337_v53  ;;  %v416_v19 = vsel %vm357_vm3, %v413_v22, %v415_v47  ;;  %v418_v1 = vsel %vm357_vm3, %v415_v47, %v417_v15  ;;  %v242_v39 = vadd.f32 %v234_v2, %v185_v5  ;;  %v447_v21 = vld [vmem:[#allocation2] ss:$2 sm:$0xff]  ;;  %v455_v32 = vld [vmem:[#allocation2 + $0x1] ss:$2 sm:$0xff] }
  0xb4   :  { %v322_v4 = vrot.slane %v300_v56, 1  ;;  %v433_v24 = vadd.f32 %v416_v19, %v385_v20  ;;  %v397_v58 = vmul.f32 %v2597_v46, %v224_v0  ;;  %v372_v34 = vsel %vm357_vm3, %v369_v26, %v371_v6  ;;  %v2821_v26 = vld [vmem:[#allocation5 + $0x28] sm:$0xff]  ;;  %686 = vmatpush.msra.mxu3 %v2823_v36 }
  0xb5   :  { %v434_v29 = vadd.f32 %v418_v1, %v386_v62  ;;  %v291_v22 = vadd.f32 %v274_v23, %v242_v39  ;;  %v449_v23 = vld [vmem:[#allocation2 + $0x10] ss:$2 sm:$0xff]  ;;  %v457_v27 = vld [vmem:[#allocation2 + $0x11] ss:$2 sm:$0xff]  ;;  %v2814_v37 = vmax.f32 %v447_v21, %v455_v32  ;;  %633 = vmatpush.msra.mxu2 %v2821_v26 }
  0xb6   :  { %v323_v60 = vsel %vm260_vm2, %v320_v50, %v322_v4  ;;  %442 = vst.msk [vmem:[#allocation2 + $0x20] sm:$0xff] %vm437_vm4, %v433_v24  ;;  %v419_v16 = vrot.slane %v397_v58, 2  ;;  %v2818_v25 = vmax.f32 %v449_v23, %v457_v27  ;;  %687 = vmatpush.msra.mxu3 %v2828_v12 }
  0xb7   :  { %v338_v9 = vadd.f32 %v323_v60, %v290_v51  ;;  %443 = vst.msk [vmem:[#allocation2 + $0x28] sm:$0xff] %vm437_vm4, %v434_v29  ;;  %v339_v17 = vadd.f32 %v322_v4, %v291_v22  ;;  %v2039_v11 = vmul.f32 -1.442695, %v2814_v37  ;;  %634 = vmatpush.msra.mxu2 %v2825_v40 }
  0xb8   :  { %v420_v30 = vsel %vm357_vm3, %v417_v15, %v419_v16  ;;  %v2040_v55 = vmul.f32 -1.442695, %v2818_v25 }
  0xb9   :  { %v387_v33 = vadd.f32 %v372_v34, %v338_v9  ;;  %v388_v61 = vadd.f32 %v371_v6, %v339_v17  ;;  %2167 = vpow2.f32 %v2039_v11 }
  0xba   :  { %2169 = vpow2.f32 %v2040_v55 }
  0xbb   :  { %v435_v50 = vadd.f32 %v420_v30, %v387_v33  ;;  %v436_v59 = vadd.f32 %v419_v16, %v388_v61 }
  0xbd   :  { %444 = vst.msk [vmem:[#allocation2 + $0x30] sm:$0xff] %vm437_vm4, %v435_v50 }
  0xbe   :  { %446 = vst.msk [vmem:[#allocation2 + $0x38] sm:$0x3f] %vm445_vm5, %v436_v59  ;;  %v451_v42 = vld [vmem:[#allocation2 + $0x20] ss:$2 sm:$0xff]  ;;  %v459_v38 = vld [vmem:[#allocation2 + $0x21] ss:$2 sm:$0xff] }
  0xbf   :  { %v2833_v0 = vmax.f32 %v451_v42, %v459_v38  ;;  %v2168_v47 = vpop.eup %2167 }
  0xc0   :  { %v478_v13 = vadd.f32 1.0, %v2168_v47  ;;  %v2170_v52 = vpop.eup %2169 }
  0xc1   :  { %v2041_v15 = vmul.f32 -1.442695, %v2833_v0  ;;  %v479_v3 = vadd.f32 1.0, %v2170_v52 }
  0xc2   :  { %v491_v19 = vand.u32 2147483647, %v478_v13  ;;  %v493_v1 = vand.u32 2147483648, %v478_v13  ;;  %vm487_vm7 = vweird.f32 %v478_v13 }
  0xc3   :  { %2171 = vpow2.f32 %v2041_v15  ;;  %v508_v29 = vand.u32 2147483648, %v479_v3  ;;  %v506_v9 = vand.u32 2147483647, %v479_v3  ;;  %vm502_vm11 = vweird.f32 %v479_v3 }
  0xc4   :  { %2173 = vrcp.f32 %v478_v13  ;;  %vm492_vm10 = vcmp.eq.f32.partialorder %v491_v19, 8.507059e+37  ;;  %v494_v16 = vor.u32 1.1754944e-38, %v493_v1 }
  0xc5   :  { %v453_v44 = vld [vmem:[#allocation2 + $0x30] ss:$2 sm:$0x7f]  ;;  %v461_v7 = vld [vmem:[#allocation2 + $0x31] ss:$2 sm:$0x7f]  ;;  %2175 = vrcp.f32 %v479_v3 }
  0xc6   :  { %v2837_v10 = vmax.f32 %v453_v44, %v461_v7  ;;  %v509_v61 = vor.u32 1.1754944e-38, %v508_v29  ;;  %vm507_vm13 = vcmp.eq.f32.partialorder %v506_v9, 8.507059e+37 }
  0xc8   :  { %v2042_v5 = vmul.f32 -1.442695, %v2837_v10 }
  0xc9   :  { %v2172_v53 = vpop.eup %2171 }
  0xca   :  { %v480_v2 = vadd.f32 1.0, %v2172_v53  ;;  %v2174_v56 = vpop.eup %2173  ;;  %2177 = vpow2.f32 %v2042_v5 }
  0xcb   :  { %v483_v6 = vmul.f32 %v2174_v56, %v478_v13  ;;  %v2176_v51 = vpop.eup %2175  ;;  %vm488_vm6 = vweird.f32 %v2174_v56 }
  0xcc   :  { %2179 = vrcp.f32 %v480_v2  ;;  %v498_v62 = vmul.f32 %v2176_v51, %v479_v3  ;;  %vm503_vm8 = vweird.f32 %v2176_v51  ;;  %vm489_vm9 = vmor %vm487_vm7, %vm488_vm6  ;;  %v523_v50 = vand.u32 2147483648, %v480_v2 }
  0xcd   :  { %v484_v20 = vsub.f32 1.0, %v483_v6  ;;  %vm504_vm12 = vmor %vm502_vm11, %vm503_vm8  ;;  %v521_v42 = vand.u32 2147483647, %v480_v2  ;;  %vm517_vm15 = vweird.f32 %v480_v2 }
  0xce   :  { %v499_v4 = vsub.f32 1.0, %v498_v62 }
  0xcf   :  { %v485_v39 = vmul.f32 %v2174_v56, %v484_v20  ;;  %vm522_vm7 = vcmp.eq.f32.partialorder %v521_v42, 8.507059e+37 }
  0xd0   :  { %v2178_v24 = vpop.eup %2177  ;;  %v500_v60 = vmul.f32 %v2176_v51, %v499_v4 }
  0xd1   :  { %v486_v22 = vadd.f32 %v2174_v56, %v485_v39  ;;  %v481_v32 = vadd.f32 1.0, %v2178_v24 }
  0xd2   :  { %v2180_v58 = vpop.eup %2179  ;;  %v501_v21 = vadd.f32 %v2176_v51, %v500_v60 }
  0xd3   :  { %v513_v34 = vmul.f32 %v2180_v58, %v480_v2  ;;  %v490_v17 = vsel %vm489_vm9, %v2174_v56, %v486_v22  ;;  %vm518_vm14 = vweird.f32 %v2180_v58  ;;  %2181 = vrcp.f32 %v481_v32 }
  0xd4   :  { %v495_v33 = vsel %vm492_vm10, %v494_v16, %v490_v17  ;;  %v505_v27 = vsel %vm504_vm12, %v2176_v51, %v501_v21  ;;  %vm519_vm6 = vmor %vm517_vm15, %vm518_vm14  ;;  %v538_v19 = vand.u32 2147483648, %v481_v32  ;;  %v536_v39 = vand.u32 2147483647, %v481_v32  ;;  %v2868_v17 = vld [vmem:[%s3465_s7 + $0x18] sm:$0xff] }
  0xd5   :  { %v514_v30 = vsub.f32 1.0, %v513_v34  ;;  %v542_v23 = vmul.f32 %v495_v33, %v2814_v37  ;;  %v510_v59 = vsel %vm507_vm13, %v509_v61, %v505_v27  ;;  %v524_v37 = vor.u32 1.1754944e-38, %v523_v50  ;;  %v2873_v21 = vld [vmem:[%s3465_s7 + $0x58] sm:$0xff]  ;;  %782 = vmatpush.msrb.mxu0 %v2868_v17 }
  0xd6   :  { %v543_v38 = vmul.f32 %v510_v59, %v2818_v25  ;;  %vm532_vm9 = vweird.f32 %v481_v32  ;;  %v539_v4 = vor.u32 1.1754944e-38, %v538_v19  ;;  %vm537_vm11 = vcmp.eq.f32.partialorder %v536_v39, 8.507059e+37  ;;  %859 = vmatpush.msrb.mxu1 %v2873_v21  ;;  %v2891_v59 = vld [vmem:[%s3465_s7] sm:$0xff] }
  0xd7   :  { %v515_v11 = vmul.f32 %v2180_v58, %v514_v30  ;;  %2043 = vmatmul.msk.f32.vlgmr.msra.gmra.mxu1 %vm437_vm4, %v542_v23  ;;  %v604_v55 = vrot.slane %v542_v23, 1  ;;  %v657_v15 = vrot.slane %v542_v23, 2  ;;  %v2885_v23 = vld [vmem:[%s3465_s7 + $0x8] sm:$0xff]  ;;  %vm708_vm12 = vcmask 258048  }
  0xd8   :  { %v605_v7 = vrot.slane %v543_v38, 1  ;;  %v658_v47 = vrot.slane %v543_v38, 2 }
  0xd9   :  { %v516_v44 = vadd.f32 %v2180_v58, %v515_v11  ;;  %v2182_v5 = vpop.eup %2181 }
  0xda   :  { %v606_v52 = vsel %vm260_vm2, %v604_v55, %v605_v7  ;;  %v659_v53 = vsel %vm357_vm3, %v657_v15, %v658_v47  ;;  %v528_v6 = vmul.f32 %v2182_v5, %v481_v32  ;;  %vm533_vm8 = vweird.f32 %v2182_v5  ;;  %v2878_v32 = vld [vmem:[%s3465_s7 + $0x10] sm:$0xff] }
  0xdb   :  { %v520_v13 = vsel %vm519_vm6, %v2180_v58, %v516_v44  ;;  %2047 = vmatmul.msk.f32.vlgmr.msra.gmra.mxu2 %vm437_vm4, %v606_v52  ;;  %2051 = vmatmul.msk.f32.vlgmr.msra.gmra.mxu3 %vm437_vm4, %v659_v53  ;;  %vm534_vm10 = vmor %vm532_vm9, %vm533_vm8 }
  0xdc   :  { %v525_v3 = vsel %vm522_vm7, %v524_v37, %v520_v13  ;;  %v529_v51 = vsub.f32 1.0, %v528_v6  ;;  %783 = vmatpush.msrb.mxu0 %v2878_v32  ;;  %v2905_v6 = vld [vmem:[%s3465_s7 + $0x38] sm:$0xff] }
  0xdd   :  { %v544_v25 = vmul.f32 %v525_v3, %v2833_v0 }
  0xde   :  { %v530_v1 = vmul.f32 %v2182_v5, %v529_v51  ;;  %784 = vmatpush.msrb.mxu0 %v2885_v23  ;;  %v2910_v51 = vld [vmem:[%s3465_s7 + $0x48] sm:$0xff] }
  0xdf   :  { %v607_v56 = vrot.slane %v544_v25, 1  ;;  %v660_v2 = vrot.slane %v544_v25, 2  ;;  %2044 = vmatmul.msk.f32.gmra.mxu1 %vm437_vm4, %v543_v38 }
  0xe0   :  { %v531_v0 = vadd.f32 %v2182_v5, %v530_v1  ;;  %785 = vmatpush.msrb.mxu0 %v2891_v59 }
  0xe1   :  { %v608_v20 = vsel %vm260_vm2, %v605_v7, %v607_v56  ;;  %v661_v62 = vsel %vm357_vm3, %v658_v47, %v660_v2 }
  0xe2   :  { %v535_v24 = vsel %vm534_vm10, %v2182_v5, %v531_v0  ;;  %822 = vmatpush.msra.mxu0 %v2905_v6 }
  0xe3   :  { %2048 = vmatmul.msk.f32.gmra.mxu2 %vm437_vm4, %v608_v20  ;;  %2052 = vmatmul.msk.f32.gmra.mxu3 %vm437_vm4, %v661_v62  ;;  %v540_v29 = vsel %vm537_vm11, %v539_v4, %v535_v24  ;;  %v2918_v20 = vld [vmem:[%s3465_s7 + $0x30] sm:$0xff]  ;;  %vm873_vm11 = vcmask 257024  }
  0xe4   :  { %v545_v58 = vmul.f32 %v540_v29, %v2837_v10  ;;  %v2159_v10 = vld [vmem:[%s3464_s6] ss:$0 sm:$0xff]  ;;  %823 = vmatpush.msra.mxu0 %v2918_v20 }
  0xe6   :  { %v609_v22 = vrot.slane %v545_v58, 1  ;;  %v662_v60 = vrot.slane %v545_v58, 2 }
  0xe7   :  { %2045 = vmatmul.msk.f32.gmra.mxu1 %vm437_vm4, %v544_v25 }
  0xe8   :  { %v610_v9 = vsel %vm260_vm2, %v607_v56, %v609_v22  ;;  %v663_v16 = vsel %vm357_vm3, %v660_v2, %v662_v60  ;;  %v2900_v2 = vld [vmem:[%s3465_s7 + $0x50] sm:$0xff] }
  0xe9   :  { %860 = vmatpush.msrb.mxu1 %v2900_v2 }
  0xeb   :  { %2049 = vmatmul.msk.f32.gmra.mxu2 %vm437_vm4, %v610_v9  ;;  %2053 = vmatmul.msk.f32.gmra.mxu3 %vm437_vm4, %v663_v16  ;;  %v2926_v9 = vld [vmem:[%s3465_s7 + $0x28] sm:$0xff]  ;;  %v2931_v16 = vld [vmem:[%s3465_s7 + $0x40] sm:$0xff] }
  0xec   :  { %861 = vmatpush.msrb.mxu1 %v2910_v51  ;;  %824 = vmatpush.msra.mxu0 %v2926_v9 }
  0xee   :  { %862 = vmatpush.msrb.mxu1 %v2931_v16 }
  0xef   :  { %2046 = vmatmul.msk.f32.gmra.mxu1 %vm437_vm4, %v545_v58 }
  0xf0   :  { %1587 = vmatpush.msra.mxu1 %v2768_v28 }
  0xf2   :  { %1588 = vmatpush.msra.mxu1 %v2801_v41 }
  0xf3   :  { %2050 = vmatmul.msk.f32.gmra.mxu2 %vm437_vm4, %v609_v22  ;;  %2054 = vmatmul.msk.f32.gmra.mxu3 %vm437_vm4, %v662_v60 }
  0xf4   :  { %1589 = vmatpush.msra.mxu1 %v2823_v36 }
  0xf6   :  { %1590 = vmatpush.msra.mxu1 %v2828_v12 }
 0x154   :  { %v580_v34 = vpop.f32.mrf.mxu1 }
 0x155   :  { %v595_v33 = vadd.f32 %v2159_v10, %v580_v34 }
 0x15c   :  { %v583_v27 = vpop.f32.mrf.mxu1 }
 0x15d   :  { %v596_v42 = vadd.f32 %v2159_v10, %v583_v27 }
 0x15e   :  { %v636_v61 = vpop.f32.mrf.mxu2  ;;  %v689_v30 = vpop.f32.mrf.mxu3 }
 0x15f   :  { %v648_v50 = vadd.f32 %v636_v61, %v595_v33  ;;  %v2939_v61 = vld [vmem:[%s3465_s7 + $0x20] sm:$0xff] }
 0x160   :  { %825 = vmatpush.msra.mxu0 %v2939_v61 }
 0x161   :  { %v701_v11 = vadd.f32 %v689_v30, %v648_v50 }
 0x163   :  { %705 = vst.msk [vmem:[#allocation3] sm:$0xff] %vm437_vm4, %v701_v11 }
 0x164   :  { %v586_v44 = vpop.f32.mrf.mxu1 }
 0x165   :  { %v597_v47 = vadd.f32 %v2159_v10, %v586_v44 }
 0x166   :  { %v639_v38 = vpop.f32.mrf.mxu2  ;;  %v692_v55 = vpop.f32.mrf.mxu3 }
 0x167   :  { %v649_v15 = vadd.f32 %v639_v38, %v596_v42 }
 0x169   :  { %v702_v7 = vadd.f32 %v692_v55, %v649_v15 }
 0x16b   :  { %706 = vst.msk [vmem:[#allocation3 + $0x8] sm:$0xff] %vm437_vm4, %v702_v7 }
 0x16c   :  { %v589_v5 = vpop.f32.mrf.mxu1 }
 0x16d   :  { %v598_v19 = vadd.f32 %v2159_v10, %v589_v5 }
 0x16e   :  { %v642_v37 = vpop.f32.mrf.mxu2  ;;  %v695_v13 = vpop.f32.mrf.mxu3 }
 0x16f   :  { %v650_v52 = vadd.f32 %v642_v37, %v597_v47 }
 0x171   :  { %v703_v53 = vadd.f32 %v695_v13, %v650_v52 }
 0x172   :  { %v710_v3 = vld [vmem:[#allocation3] ss:$2 sm:$0xff]  ;;  %v714_v25 = vld [vmem:[#allocation3 + $0x1] ss:$2 sm:$0xff] }
 0x173   :  { %v717_v56 = vmax.f32 %v710_v3, %v714_v25  ;;  %707 = vst.msk [vmem:[#allocation3 + $0x10] sm:$0xff] %vm437_vm4, %v703_v53 }
 0x175   :  { %v2055_v62 = vmul.f32 -1.442695, %v717_v56 }
 0x176   :  { %v645_v1 = vpop.f32.mrf.mxu2  ;;  %v698_v0 = vpop.f32.mrf.mxu3 }
 0x177   :  { %2183 = vpow2.f32 %v2055_v62  ;;  %v651_v39 = vadd.f32 %v645_v1, %v598_v19 }
 0x179   :  { %v704_v4 = vadd.f32 %v698_v0, %v651_v39 }
 0x17b   :  { %709 = vst.msk [vmem:[#allocation3 + $0x18] sm:$0x1f] %vm708_vm12, %v704_v4  ;;  %v2956_v4 = vld [vmem:[%s3467_s9 + $0x18] sm:$0xff] }
 0x17c   :  { %919 = vmatpush.msrb.mxu2 %v2956_v4 }
 0x17d   :  { %v2184_v24 = vpop.eup %2183 }
 0x17e   :  { %v725_v29 = vadd.f32 1.0, %v2184_v24  ;;  %v2961_v24 = vld [vmem:[%s3467_s9 + $0x10] sm:$0xff] }
 0x17f   :  { %920 = vmatpush.msrb.mxu2 %v2961_v24 }
 0x180   :  { %2185 = vrcp.f32 %v725_v29  ;;  %v738_v27 = vand.u32 2147483648, %v725_v29  ;;  %v736_v11 = vand.u32 2147483647, %v725_v29  ;;  %vm732_vm14 = vweird.f32 %v725_v29 }
 0x182   :  { %v712_v58 = vld [vmem:[#allocation3 + $0x10] ss:$2 sm:$0x3f]  ;;  %v716_v22 = vld [vmem:[#allocation3 + $0x11] ss:$2 sm:$0x3f] }
 0x183   :  { %v718_v60 = vmax.f32 %v712_v58, %v716_v22  ;;  %v739_v38 = vor.u32 1.1754944e-38, %v738_v27  ;;  %vm737_vm6 = vcmp.eq.f32.partialorder %v736_v11, 8.507059e+37  ;;  %v2970_v58 = vld [vmem:[%s3467_s9 + $0x58] sm:$0xff]  ;;  %v2975_v22 = vld [vmem:[%s3467_s9 + $0x8] sm:$0xff]  ;;  %v2998_v27 = vld [vmem:[%s3467_s9] sm:$0xff] }
 0x184   :  { %3500 = vst [vmem:[#allocation18_spill] sm:$0xff] %v2970_v58  ;;  %921 = vmatpush.msrb.mxu2 %v2975_v22 }
 0x185   :  { %v2056_v10 = vmul.f32 -1.442695, %v718_v60 }
 0x186   :  { %v2186_v34 = vpop.eup %2185  ;;  %922 = vmatpush.msrb.mxu2 %v2998_v27 }
 0x187   :  { %v728_v33 = vmul.f32 %v2186_v34, %v725_v29  ;;  %2187 = vpow2.f32 %v2056_v10  ;;  %vm733_vm13 = vweird.f32 %v2186_v34  ;;  %v2076_v29 = vld [vmem:[%s3467_s9 + $0x38] sm:$0xff] }
 0x188   :  { %vm734_vm15 = vmor %vm732_vm14, %vm733_vm13  ;;  %951 = vmatpush.msrb.mxu3 %v2076_v29 }
 0x189   :  { %v729_v30 = vsub.f32 1.0, %v728_v33  ;;  %v2074_v33 = vld [vmem:[%s3467_s9 + $0x28] sm:$0xff] }
 0x18b   :  { %v730_v50 = vmul.f32 %v2186_v34, %v729_v30  ;;  %v2993_v30 = vld [vmem:[%s3467_s9 + $0x48] sm:$0xff] }
 0x18c   :  { %3502 = vst [vmem:[#allocation20_spill] sm:$0xff] %v2993_v30 }
 0x18d   :  { %v731_v28 = vadd.f32 %v2186_v34, %v730_v50  ;;  %v2188_v42 = vpop.eup %2187  ;;  %v3503_v50 = vrot.slane %v2496_v8, 2 }
 0x18e   :  { %v726_v15 = vadd.f32 1.0, %v2188_v42 }
 0x18f   :  { %v735_v55 = vsel %vm734_vm15, %v2186_v34, %v731_v28  ;;  %v2984_v34 = vld [vmem:[%s3467_s9 + $0x50] sm:$0xff]  ;;  %2099 = vmatpush.msk.msra.mxu2 %vm105_vm0, %v3503_v50  ;;  %v2160_v28 = vld [vmem:[%s3466_s8] ss:$0 sm:$0xff] }
 0x190   :  { %v740_v44 = vsel %vm737_vm6, %v739_v38, %v735_v55  ;;  %2189 = vrcp.f32 %v726_v15  ;;  %v753_v37 = vand.u32 2147483648, %v726_v15  ;;  %v751_v12 = vand.u32 2147483647, %v726_v15  ;;  %3501 = vst [vmem:[#allocation19_spill] sm:$0xff] %v2984_v34 }
 0x191   :  { %v757_v7 = vmul.f32 %v740_v44, %v717_v56  ;;  %vm747_vm8 = vweird.f32 %v726_v15 }
 0x192   :  { %v754_v53 = vor.u32 1.1754944e-38, %v753_v37  ;;  %vm752_vm10 = vcmp.eq.f32.partialorder %v751_v12, 8.507059e+37 }
 0x193   :  { %2057 = vmatmul.msk.f32.vlgmr.msrb.gmra.mxu0 %vm437_vm4, %v757_v7  ;;  %v840_v56 = vrot.slane %v757_v7, 2  ;;  %v803_v39 = vrot.slane %v757_v7, 1 }
 0x194   :  { %980 = vmatpush.msrb.mxu0 %v2970_v58 }
 0x196   :  { %v2190_v41 = vpop.eup %2189  ;;  %981 = vmatpush.msrb.mxu0 %v2984_v34 }
 0x197   :  { %v743_v36 = vmul.f32 %v2190_v41, %v726_v15  ;;  %vm748_vm7 = vweird.f32 %v2190_v41 }
 0x198   :  { %vm749_vm9 = vmor %vm747_vm8, %vm748_vm7  ;;  %982 = vmatpush.msrb.mxu0 %v2993_v30  ;;  %vm1005_vm7 = vcmask 122880  }
 0x199   :  { %v744_v47 = vsub.f32 1.0, %v743_v36 }
 0x19b   :  { %v745_v13 = vmul.f32 %v2190_v41, %v744_v47 }
 0x19d   :  { %v746_v52 = vadd.f32 %v2190_v41, %v745_v13 }
 0x19f   :  { %v750_v3 = vsel %vm749_vm9, %v2190_v41, %v746_v52  ;;  %v2073_v52 = vld [vmem:[%s3467_s9 + $0x20] sm:$0xff] }
 0x1a0   :  { %v755_v25 = vsel %vm752_vm10, %v754_v53, %v750_v3  ;;  %v3018_v53 = vld [vmem:[%s3467_s9 + $0x40] sm:$0xff] }
 0x1a1   :  { %v758_v5 = vmul.f32 %v755_v25, %v718_v60  ;;  %v2075_v60 = vld [vmem:[%s3467_s9 + $0x30] sm:$0xff]  ;;  %3504 = vst [vmem:[#allocation21_spill] sm:$0xff] %v3018_v53  ;;  %983 = vmatpush.msrb.mxu0 %v3018_v53  ;;  %s1980_s9 = sshll.u32 %s3474_s16, 4  ;;  %s1981_s9 = int_to_ptr.hbm [resolvable:$true] %s1980_s9 }
 0x1a2   :  { %952 = vmatpush.msrb.mxu3 %v2075_v60 }
 0x1a3   :  { %2058 = vmatmul.msk.f32.gmra.mxu0 %vm437_vm4, %v758_v5  ;;  %v841_v62 = vrot.slane %v758_v5, 2  ;;  %v804_v1 = vrot.slane %v758_v5, 1 }
 0x1a4   :  { %953 = vmatpush.msrb.mxu3 %v2074_v33 }
 0x1a5   :  { %v842_v19 = vsel %vm357_vm3, %v840_v56, %v841_v62  ;;  %v805_v0 = vsel %vm260_vm2, %v803_v39, %v804_v1 }
 0x1a6   :  { %2069 = vmatmul.msk.f32.vlgmr.msrb.gmra.mxu1 %vm437_vm4, %v842_v19  ;;  %954 = vmatpush.msrb.mxu3 %v2073_v52 }
 0x1a7   :  { %1845 = vmatpush.msrb.mxu1 %v2076_v29 }
 0x1a8   :  { %1480 = vmatpush.msra.mxu3 %v2758_v35 }
 0x1a9   :  { %1846 = vmatpush.msrb.mxu1 %v2075_v60 }
 0x1aa   :  { %1481 = vmatpush.msra.mxu3 %v2764_v63 }
 0x1ab   :  { %2063 = vmatmul.msk.f32.vlgmr.msra.gmra.mxu0 %vm437_vm4, %v805_v0  ;;  %1847 = vmatpush.msrb.mxu1 %v2074_v33  ;;  %v1025_v0 = vld [vmem:[%s3498_s23 + $0x1] sm:$0x1] }
 0x1ac   :  { %1535 = vmatpush.msra.mxu0 %v2766_v31  ;;  %1482 = vmatpush.msra.mxu3 %v2778_v43 }
 0x1ad   :  { %1848 = vmatpush.msrb.mxu1 %v2073_v52 }
 0x1ae   :  { %2070 = vmatmul.msk.f32.gmra.mxu1 %vm437_vm4, %v841_v62  ;;  %1536 = vmatpush.msra.mxu0 %v2799_v18 }
 0x1af   :  { %1483 = vmatpush.msra.mxu3 %v2797_v14 }
 0x1b0   :  { %1537 = vmatpush.msra.mxu0 %v2821_v26 }
 0x1b2   :  { %1538 = vmatpush.msra.mxu0 %v2825_v40 }
 0x1b3   :  { %2064 = vmatmul.msk.f32.gmra.mxu0 %vm437_vm4, %v804_v1 }
 0x210   :  { %v787_v10 = vpop.f32.mrf.mxu0 }
 0x211   :  { %v796_v42 = vadd.f32 %v2160_v28, %v787_v10 }
 0x220   :  { %v790_v11 = vpop.f32.mrf.mxu0 }
 0x221   :  { %v797_v7 = vadd.f32 %v2160_v28, %v790_v11 }
 0x223   :  { %v864_v38 = vpop.f32.mrf.mxu1 }
 0x228   :  { %v827_v55 = vpop.f32.mrf.mxu0 }
 0x229   :  { %v833_v15 = vadd.f32 %v827_v55, %v796_v42 }
 0x22b   :  { %v870_v44 = vadd.f32 %v864_v38, %v833_v15  ;;  %v867_v47 = vpop.f32.mrf.mxu1 }
 0x22d   :  { %872 = vst.msk [vmem:[#allocation4] sm:$0xff] %vm437_vm4, %v870_v44 }
 0x230   :  { %v830_v41 = vpop.f32.mrf.mxu0 }
 0x231   :  { %v834_v36 = vadd.f32 %v830_v41, %v797_v7 }
 0x233   :  { %v871_v8 = vadd.f32 %v867_v47, %v834_v36 }
 0x235   :  { %874 = vst.msk [vmem:[#allocation4 + $0x8] sm:$0xf] %vm873_vm11, %v871_v8 }
 0x23c   :  { %v875_v37 = vld [vmem:[#allocation4] ss:$2 sm:$0x3f]  ;;  %v877_v13 = vld [vmem:[#allocation4 + $0x1] ss:$2 sm:$0x3f] }
 0x23d   :  { %v878_v12 = vmax.f32 %v875_v37, %v877_v13 }
 0x23f   :  { %v2071_v3 = vmul.f32 -1.442695, %v878_v12 }
 0x241   :  { %2191 = vpow2.f32 %v2071_v3 }
 0x247   :  { %v2192_v25 = vpop.eup %2191 }
 0x248   :  { %v882_v5 = vadd.f32 1.0, %v2192_v25 }
 0x24a   :  { %2193 = vrcp.f32 %v882_v5  ;;  %v894_v62 = vand.u32 2147483648, %v882_v5  ;;  %v892_v63 = vand.u32 2147483647, %v882_v5  ;;  %vm888_vm13 = vweird.f32 %v882_v5 }
 0x24c   :  { %v895_v43 = vor.u32 1.1754944e-38, %v894_v62  ;;  %vm893_vm15 = vcmp.eq.f32.partialorder %v892_v63, 8.507059e+37 }
 0x250   :  { %v2194_v35 = vpop.eup %2193 }
 0x251   :  { %v884_v56 = vmul.f32 %v2194_v35, %v882_v5  ;;  %vm889_vm0 = vweird.f32 %v2194_v35 }
 0x252   :  { %vm890_vm14 = vmor %vm888_vm13, %vm889_vm0 }
 0x253   :  { %v885_v31 = vsub.f32 1.0, %v884_v56 }
 0x255   :  { %v886_v19 = vmul.f32 %v2194_v35, %v885_v31 }
 0x257   :  { %v887_v1 = vadd.f32 %v2194_v35, %v886_v19 }
 0x259   :  { %v891_v18 = vsel %vm890_vm14, %v2194_v35, %v887_v1 }
 0x25a   :  { %v896_v26 = vsel %vm893_vm15, %v895_v43, %v891_v18 }
 0x25b   :  { %v898_v14 = vmul.f32 %v896_v26, %v878_v12 }
 0x25d   :  { %2072 = vmatmul.msk.f32.vlgmr.msrb.gmra.mxu2 %vm437_vm4, %v898_v14  ;;  %v936_v40 = vrot.slane %v898_v14, 1  ;;  %v965_v39 = vrot.slane %v898_v14, 2 }
 0x25e   :  { %1681 = vmatpush.msrb.mxu2 %v2868_v17  ;;  %v1058_v17 = vpop.permute.xlu2 %1057 }
 0x25f   :  { %2077 = vmatmul.msk.f32.vlgmr.msrb.gmra.mxu3 %vm437_vm4, %v936_v40  ;;  %2082 = vmatmul.msk.f32.vlgmr.msrb.gmra.mxu0 %vm437_vm4, %v965_v39  ;;  %v3087_v11 = vmul.f32 %v1058_v17, %v2621_v57 }
 0x260   :  { %1756 = vmatpush.msrb.mxu3 %v2873_v21  ;;  %1682 = vmatpush.msrb.mxu2 %v2878_v32  ;;  %v1053_v21 = vpop.permute.xlu1 %1052 }
 0x261   :  { %1814 = vmatpush.msrb.mxu0 %v2956_v4  ;;  %v1163_v60 = vmul.f32 %v1053_v21, %v2600_v48  ;;  %v1257_v50 = vmul.f32 %v1053_v21, %v2603_v49  ;;  %v3114_v5 = vmul.f32 %v1053_v21, %v2621_v57 }
 0x262   :  { %1683 = vmatpush.msrb.mxu2 %v2885_v23  ;;  %1757 = vmatpush.msrb.mxu3 %v2900_v2 }
 0x263   :  { %1815 = vmatpush.msrb.mxu0 %v2961_v24  ;;  %v1179_v7 = vrot.slane %v1163_v60, 1  ;;  %v1273_v12 = vrot.slane %v1257_v50, 2  ;;  %v2361_v60 = vmov 4.0  }
 0x264   :  { %1684 = vmatpush.msrb.mxu2 %v2891_v59  ;;  %1758 = vmatpush.msrb.mxu3 %v2910_v51  ;;  %v1063_v59 = vpop.permute.xlu0 %1062  ;;  %2195 = vrcp.f32 %v2361_v60 }
 0x265   :  { %2100 = vmatmul.msk.f32.vlgmr.msra.gmra.mxu2 %vm101_vm1, %v1025_v0  ;;  %1816 = vmatpush.msrb.mxu0 %v2975_v22  ;;  %v1165_v35 = vmul.f32 %v1063_v59, %v2600_v48  ;;  %v1259_v56 = vmul.f32 %v1063_v59, %v2603_v49  ;;  %vm989_vm1 = vcmask 125952  }
 0x266   :  { %1720 = vmatpush.msra.mxu2 %v2905_v6  ;;  %1759 = vmatpush.msrb.mxu3 %v2931_v16  ;;  %v1115_v32 = vpop.permute.xlu2 %1114 }
 0x267   :  { %1817 = vmatpush.msrb.mxu0 %v2998_v27  ;;  %v3070_v29 = vmul.f32 %v1115_v32, %v2594_v45  ;;  %v3077_v10 = vmul.f32 %v1115_v32, %v2597_v46  ;;  %v3093_v55 = vmul.f32 %v1115_v32, %v2612_v54 }
 0x268   :  { %1721 = vmatpush.msra.mxu2 %v2918_v20  ;;  %v1110_v23 = vpop.permute.xlu1 %1109  ;;  %v3061_v20 = vmul.f32 %v1058_v17, %v2600_v48 }
 0x269   :  { %v1227_v15 = vrot.slane %v3070_v29, 1  ;;  %v1321_v41 = vrot.slane %v3077_v10, 2  ;;  %v1210_v52 = vmul.f32 %v1110_v23, %v2594_v45  ;;  %v1304_v3 = vmul.f32 %v1110_v23, %v2597_v46 }
 0x26a   :  { %1722 = vmatpush.msra.mxu2 %v2926_v9  ;;  %v3064_v9 = vmul.f32 %v1058_v17, %v2603_v49  ;;  %v1180_v28 = vrot.slane %v3061_v20, 1  ;;  %v3151_v32 = vmul.f32 %v1110_v23, %v2612_v54 }
 0x26b   :  { %v1226_v39 = vrot.slane %v1210_v52, 1  ;;  %v1320_v0 = vrot.slane %v1304_v3, 2  ;;  %v2161_v52 = vld [vmem:[%s3468_s10] ss:$0 sm:$0xff] }
 0x26c   :  { %1723 = vmatpush.msra.mxu2 %v2939_v61  ;;  %v3054_v4 = vpop.permute.xlu0 %1119  ;;  %v1274_v42 = vrot.slane %v3064_v9, 2  ;;  %v3124_v62 = vsel %vm260_vm2, %v1179_v7, %v1180_v28 }
 0x26d   :  { %v1212_v14 = vmul.f32 %v3054_v4, %v2594_v45  ;;  %v1306_v17 = vmul.f32 %v3054_v4, %v2597_v46  ;;  %v3161_v23 = vsel %vm260_vm2, %v1226_v39, %v1227_v15  ;;  %v3164_v7 = vsel %vm357_vm3, %v1320_v0, %v1321_v41 }
 0x26e   :  { %v1073_v2 = vpop.permute.xlu2 %1072  ;;  %v3143_v40 = vsel %vm357_vm3, %v1273_v12, %v1274_v42 }
 0x26f   :  { %v3080_v33 = vmul.f32 %v1073_v2, %v2600_v48  ;;  %v3083_v27 = vmul.f32 %v1073_v2, %v2603_v49  ;;  %v3099_v36 = vmul.f32 %v1073_v2, %v2621_v57  ;;  %v1182_v2 = vrot.slane %v1165_v35, 1 }
 0x270   :  { %v3052_v51 = vpop.permute.xlu1 %1067  ;;  %v1229_v50 = vrot.slane %v1212_v14, 1 }
 0x271   :  { %v1186_v47 = vrot.slane %v3080_v33, 1  ;;  %v1280_v8 = vrot.slane %v3083_v27, 2  ;;  %v1166_v63 = vmul.f32 %v3052_v51, %v2600_v48  ;;  %v1260_v26 = vmul.f32 %v3052_v51, %v2603_v49 }
 0x272   :  { %v3158_v33 = vmul.f32 %v1063_v59, %v2621_v57  ;;  %v3172_v3 = vsel %vm260_vm2, %v1180_v28, %v1182_v2  ;;  %v3192_v28 = vmul.f32 %v3054_v4, %v2612_v54 }
 0x273   :  { %v1184_v9 = vrot.slane %v1166_v63, 1  ;;  %v1278_v27 = vrot.slane %v1260_v26, 2  ;;  %v3185_v63 = vmul.f32 %v3052_v51, %v2621_v57  ;;  %v3204_v51 = vsel %vm260_vm2, %v1227_v15, %v1229_v50 }
 0x274   :  { %v3058_v24 = vpop.permute.xlu0 %1124 }
 0x275   :  { %v1213_v29 = vmul.f32 %v3058_v24, %v2594_v45  ;;  %v3188_v26 = vsel %vm260_vm2, %v1182_v2, %v1184_v9  ;;  %v3195_v14 = vsel %vm260_vm2, %v1184_v9, %v1186_v47  ;;  %v3201_v0 = vsel %vm357_vm3, %v1278_v27, %v1280_v8  ;;  %v3206_v2 = vpop.eup %2195 }
 0x276   :  { %v1078_v6 = vpop.permute.xlu2 %1077  ;;  %v998_v10 = vmul.f32 4.0, %v3206_v2  ;;  %vm1002_vm6 = vweird.f32 %v3206_v2 }
 0x277   :  { %v3067_v61 = vmul.f32 %v1078_v6, %v2600_v48  ;;  %v3073_v22 = vmul.f32 %v1078_v6, %v2603_v49  ;;  %v3104_v13 = vmul.f32 %v1078_v6, %v2621_v57  ;;  %v1276_v6 = vrot.slane %v1259_v56, 2 }
 0x278   :  { %v3056_v16 = vpop.permute.xlu1 %1129  ;;  %v1307_v56 = vmul.f32 %v3058_v24, %v2597_v46  ;;  %v999_v34 = vsub.f32 1.0, %v998_v10 }
 0x279   :  { %v3484_v38 = vrot.slane %v3067_v61, 1  ;;  %v3483_v44 = vrot.slane %v3073_v22, 2  ;;  %v1214_v12 = vmul.f32 %v3056_v16, %v2594_v45  ;;  %v3175_v59 = vsel %vm357_vm3, %v1274_v42, %v1276_v6 }
 0x27a   :  { %v3179_v35 = vmul.f32 %v3056_v16, %v2597_v46  ;;  %v1231_v42 = vrot.slane %v1213_v29, 1  ;;  %v3198_v39 = vsel %vm357_vm3, %v1276_v6, %v1278_v27 }
 0x27b   :  { %v3111_v25 = vsel %vm260_vm2, %v1186_v47, %v3484_v38  ;;  %v3121_v31 = vsel %vm357_vm3, %v1280_v8, %v3483_v44  ;;  %v1233_v4 = vrot.slane %v1214_v12, 1  ;;  %v1325_v8 = vrot.slane %v1307_v56, 2 }
 0x27c   :  { %v3133_v43 = vpop.permute.xlu0 %1082  ;;  %3506 = vst [vmem:[#allocation23_spill] sm:$0xff] %v3179_v35  ;;  %v1150_v12 = vmul.f32 %v3058_v24, %v2612_v54  ;;  %v3225_v38 = vsel %vm260_vm2, %v1229_v50, %v1231_v42 }
 0x27d   :  { %v1169_v15 = vmul.f32 %v3133_v43, %v2600_v48  ;;  %v3218_v27 = vmul.f32 %v3133_v43, %v2603_v49  ;;  %v1234_v53 = vsel %vm260_vm2, %v1231_v42, %v1233_v4  ;;  %v1026_v42 = vld [vmem:[%s3462_s4] sm:$0x1]  ;;  %s2013_s4 = sshll.u32 %s3477_s19, 4  ;;  %s2365_s19 = smov [#allocation11]   ;;  %s2014_s4 = int_to_ptr.hbm [resolvable:$true] %s2013_s4 }
 0x27e   :  { %v1140_v37 = vpop.permute.xlu2 %1139  ;;  %s2000_s25 = sshll.u32 %s2365_s19, 4  ;;  %s2001_s25 = int_to_ptr.vmem [resolvable:$true] %s2000_s25 }
 0x27f   :  { %v3127_v19 = vmul.f32 %v1140_v37, %v2594_v45  ;;  %v3136_v18 = vmul.f32 %v1140_v37, %v2597_v46  ;;  %v3148_v21 = vmul.f32 %v1140_v37, %v2612_v54  ;;  %v1323_v37 = vrot.slane %v1306_v17, 2 }
 0x280   :  { %v3131_v1 = vpop.permute.xlu1 %1134 }
 0x281   :  { %3505 = vst [vmem:[#allocation22_spill] sm:$0xff] %v3136_v18  ;;  %v3209_v60 = vsel %vm357_vm3, %v1321_v41, %v1323_v37  ;;  %v1215_v47 = vmul.f32 %v3131_v1, %v2594_v45  ;;  %v1151_v41 = vmul.f32 %v3056_v16, %v2612_v54  ;;  %v3235_v16 = vmul.f32 %v3131_v1, %v2597_v46 }
 0x282   :  { %v3238_v50 = vsel %vm357_vm3, %v1323_v37, %v1325_v8  ;;  %v3510_v18 = vrot.slane %v3127_v19, 1 }
 0x283   :  { %v1235_v30 = vrot.slane %v1215_v47, 1  ;;  %3507 = vst [vmem:[#allocation24_spill] sm:$0xff] %v3238_v50  ;;  %v1152_v47 = vmul.f32 %v3131_v1, %v2612_v54 }
 0x284   :  { %v1088_v29 = vpop.permute.xlu0 %1087 }
 0x285   :  { %v3254_v37 = vmul.f32 %v1088_v29, %v2603_v49  ;;  %v1236_v58 = vsel %vm260_vm2, %v1233_v4, %v1235_v30  ;;  %v1238_v1 = vsel %vm260_vm2, %v1235_v30, %v3510_v18  ;;  %v3511_v49 = vrot.slane %v3067_v61, 1 }
 0x286   :  { %v1097_v30 = vmul.f32 %v1088_v29, %v2621_v57  ;;  %v3514_v61 = vrot.slane %v3127_v19, 1 }
 0x287   :  { %v1286_v18 = vrot.slane %v3254_v37, 2 }
 0x288   :  { %v1145_v9 = vpop.permute.xlu1 %1144 }
 0x289   :  { %v3228_v56 = vmul.f32 %v1145_v9, %v2594_v45  ;;  %v3508_v45 = vrot.slane %v3179_v35, 2  ;;  %v1154_v10 = vmul.f32 %v1145_v9, %v2612_v54  ;;  %v3273_v50 = vmul.f32 %v1145_v9, %v2597_v46 }
 0x2dc   :  { %v985_v20 = vpop.f32.mrf.mxu0 }
 0x2e0   :  { %v924_v17 = vpop.f32.mrf.mxu2 }
 0x2e1   :  { %v930_v6 = vadd.f32 %v2161_v52, %v924_v17  ;;  %v1170_v17 = vmul.f32 %v1088_v29, %v2600_v48  ;;  %v1190_v48 = vrot.slane %v1169_v15, 1 }
 0x2e2   :  { %v956_v44 = vpop.f32.mrf.mxu3 }
 0x2e3   :  { %v959_v52 = vadd.f32 %v956_v44, %v930_v6  ;;  %v3243_v44 = vsel %vm357_vm3, %v1325_v8, %v3508_v45  ;;  %v1239_v8 = vrot.slane %v3228_v56, 1  ;;  %v1192_v15 = vrot.slane %v1170_v17, 1 }
 0x2e4   :  { %3509 = vst [vmem:[#allocation25_spill] sm:$0xff] %v3243_v44  ;;  %v1329_v44 = vrot.slane %v3235_v16, 2  ;;  %v1191_v35 = vsel %vm260_vm2, %v3511_v49, %v1190_v48  ;;  %v3513_v56 = vrot.slane %v3073_v22, 2 }
 0x2e5   :  { %v988_v24 = vadd.f32 %v985_v20, %v959_v52  ;;  %v1096_v20 = vmul.f32 %v3133_v43, %v2621_v57  ;;  %v1193_v49 = vsel %vm260_vm2, %v1190_v48, %v1192_v15 }
 0x2e7   :  { %v990_v52 = vsel %vm989_vm1, %v988_v24, 0.0  ;;  %v3512_v24 = vrot.slane %v3218_v27, 2 }
 0x2e8   :  { %v1047_v45 = vpop.f32.mrf.mxu2  ;;  %v991_v6 = vrot.slane %v990_v52, 4 }
 0x2e9   :  { %v1048_v43 = vadd.f32 %v1047_v45, %v1026_v42  ;;  %v1285_v17 = vsel %vm357_vm3, %v3513_v56, %v3512_v24  ;;  %v1240_v45 = vsel %vm260_vm2, %v3514_v61, %v1239_v8  ;;  %v1000_v24 = vmul.f32 %v3206_v2, %v999_v34 }
 0x2ea   :  { %v992_v4 = vadd.f32 %v991_v6, %v990_v52 }
 0x2eb   :  { %v1098_v42 = vperm.slane %v1048_v43, 0 }
 0x2ec   :  { %v993_v22 = vrot.slane %v992_v4, 2 }
 0x2ed   :  { %v1099_v54 = vadd.f32 %v1098_v42, %v3114_v5  ;;  %v1100_v6 = vadd.f32 %v1098_v42, %v3087_v11  ;;  %v1101_v46 = vadd.f32 %v1098_v42, %v3158_v33  ;;  %v1102_v57 = vadd.f32 %v1098_v42, %v3185_v63 }
 0x2ee   :  { %v1103_v9 = vadd.f32 %v1098_v42, %v3099_v36  ;;  %v1104_v29 = vadd.f32 %v1098_v42, %v3104_v13  ;;  %v1105_v19 = vadd.f32 %v1098_v42, %v1096_v20  ;;  %v1106_v37 = vadd.f32 %v1098_v42, %v1097_v30 }
 0x2ef   :  { %v1155_v52 = vadd.f32 %v3151_v32, %v1099_v54  ;;  %v1156_v48 = vadd.f32 %v3093_v55, %v1100_v6  ;;  %v1157_v34 = vadd.f32 %v3192_v28, %v1101_v46  ;;  %v1158_v43 = vadd.f32 %v1150_v12, %v1102_v57 }
 0x2f0   :  { %v1159_v5 = vadd.f32 %v1151_v41, %v1103_v9  ;;  %v1160_v56 = vadd.f32 %v1152_v47, %v1104_v29  ;;  %v1161_v11 = vadd.f32 %v3148_v21, %v1105_v19  ;;  %v1162_v33 = vadd.f32 %v1154_v10, %v1106_v37 }
 0x2f1   :  { %v1202_v63 = vadd.f32 %v3124_v62, %v1155_v52  ;;  %v1203_v36 = vadd.f32 %v3172_v3, %v1156_v48  ;;  %v1204_v13 = vadd.f32 %v3188_v26, %v1157_v34  ;;  %v1205_v20 = vadd.f32 %v3195_v14, %v1158_v43 }
 0x2f2   :  { %v1206_v32 = vadd.f32 %v3111_v25, %v1159_v5  ;;  %v1207_v30 = vadd.f32 %v1191_v35, %v1160_v56  ;;  %v1208_v55 = vadd.f32 %v1193_v49, %v1161_v11  ;;  %v1209_v42 = vadd.f32 %v1192_v15, %v1162_v33 }
 0x2f3   :  { %v1249_v28 = vadd.f32 %v3161_v23, %v1202_v63  ;;  %v1250_v41 = vadd.f32 %v3204_v51, %v1203_v36  ;;  %v1251_v21 = vadd.f32 %v3225_v38, %v1204_v13  ;;  %v1252_v12 = vadd.f32 %v1234_v53, %v1205_v20 }
 0x2f4   :  { %v1253_v47 = vadd.f32 %v1236_v58, %v1206_v32  ;;  %v1254_v62 = vadd.f32 %v1238_v1, %v1207_v30  ;;  %v1255_v10 = vadd.f32 %v1240_v45, %v1208_v55  ;;  %v1256_v3 = vadd.f32 %v1239_v8, %v1209_v42  ;;  %v3516_v1 = vld [vmem:[#allocation24_spill] sm:$0xff] }
 0x2f5   :  { %v1296_v26 = vadd.f32 %v3143_v40, %v1249_v28  ;;  %v1297_v14 = vadd.f32 %v3175_v59, %v1250_v41  ;;  %v1298_v25 = vadd.f32 %v3198_v39, %v1251_v21  ;;  %v1299_v35 = vadd.f32 %v3201_v0, %v1252_v12  ;;  %v3517_v39 = vld [vmem:[#allocation23_spill] sm:$0xff] }
 0x2f6   :  { %v1333_v15 = vrot.slane %v3273_v50, 2  ;;  %v3515_v23 = vrot.slane %v3218_v27, 2  ;;  %v1300_v53 = vadd.f32 %v3121_v31, %v1253_v47  ;;  %v1301_v58 = vadd.f32 %v1285_v17, %v1254_v62  ;;  %v3519_v27 = vld [vmem:[#allocation25_spill] sm:$0xff]  ;;  %v3520_v31 = vld [vmem:[#allocation22_spill] sm:$0xff] }
 0x2f7   :  { %v1343_v8 = vadd.f32 %v3164_v7, %v1296_v26  ;;  %v1344_v40 = vadd.f32 %v3209_v60, %v1297_v14  ;;  %v1345_v59 = vadd.f32 %v3516_v1, %v1298_v25  ;;  %v3518_v0 = vrot.slane %v3517_v39, 2 }
 0x2f8   :  { %v1287_v51 = vsel %vm357_vm3, %v3515_v23, %v1286_v18  ;;  %v1303_v61 = vadd.f32 %v1286_v18, %v1256_v3  ;;  %v1346_v45 = vadd.f32 %v3519_v27, %v1299_v35  ;;  %v1001_v49 = vadd.f32 %v3206_v2, %v1000_v24 }
 0x2f9   :  { %v1302_v38 = vadd.f32 %v1287_v51, %v1255_v10  ;;  %v1330_v50 = vsel %vm357_vm3, %v3518_v0, %v1329_v44  ;;  %v3521_v17 = vrot.slane %v3520_v31, 2  ;;  %1351 = vst.msk [vmem:[#allocation2] sm:$0xff] %vm437_vm4, %v1343_v8  ;;  %v994_v54 = vadd.f32 %v993_v22, %v992_v4 }
 0x2fa   :  { %v1347_v60 = vadd.f32 %v1330_v50, %v1300_v53  ;;  %1352 = vst.msk [vmem:[#allocation2 + $0x8] sm:$0xff] %vm437_vm4, %v1344_v40  ;;  %v1350_v16 = vadd.f32 %v1333_v15, %v1303_v61 }
 0x2fb   :  { %v1332_v7 = vsel %vm357_vm3, %v1329_v44, %v3521_v17  ;;  %v3522_v6 = vmov %v3521_v17  ;;  %1353 = vst.msk [vmem:[#allocation2 + $0x10] sm:$0xff] %vm437_vm4, %v1345_v59  ;;  %v995_v57 = vrot.slane %v994_v54, 1  ;;  %v3333_v44 = vsel %vm1002_vm6, %v3206_v2, %v1001_v49 }
 0x2fc   :  { %v1334_v18 = vsel %vm357_vm3, %v3522_v6, %v1333_v15  ;;  %v1348_v46 = vadd.f32 %v1332_v7, %v1301_v58  ;;  %1354 = vst.msk [vmem:[#allocation2 + $0x18] sm:$0xff] %vm437_vm4, %v1346_v45 }
 0x2fd   :  { %v1349_v24 = vadd.f32 %v1334_v18, %v1302_v38  ;;  %1355 = vst.msk [vmem:[#allocation2 + $0x20] sm:$0xff] %vm437_vm4, %v1347_v60  ;;  %v996_v4 = vadd.f32 %v995_v57, %v994_v54 }
 0x2fe   :  { %1356 = vst.msk [vmem:[#allocation2 + $0x28] sm:$0xff] %vm437_vm4, %v1348_v46 }
 0x2ff   :  { %1357 = vst.msk [vmem:[#allocation2 + $0x30] sm:$0xff] %vm437_vm4, %v1349_v24  ;;  %v1004_v22 = vmul.f32 %v3333_v44, %v996_v4 }
 0x300   :  { %1358 = vst.msk [vmem:[#allocation2 + $0x38] sm:$0x3f] %vm445_vm5, %v1350_v16 }
 0x301   :  { %v1359_v9 = vld [vmem:[#allocation2] ss:$2 sm:$0xff]  ;;  %v1363_v29 = vld [vmem:[#allocation2 + $0x1] ss:$2 sm:$0xff]  ;;  %1006 = vst.msk [vmem:[#allocation8] sm:$0x1] %vm1005_vm7, %v1004_v22 }
 0x302   :  { %v3341_v19 = vmax.f32 %v1359_v9, %v1363_v29 }
 0x303   :  { %v1360_v2 = vld [vmem:[#allocation2 + $0x10] ss:$2 sm:$0xff]  ;;  %v1364_v37 = vld [vmem:[#allocation2 + $0x11] ss:$2 sm:$0xff] }
 0x304   :  { %v2101_v52 = vmul.f32 -1.442695, %v3341_v19  ;;  %v3344_v48 = vmax.f32 %v1360_v2, %v1364_v37 }
 0x305   :  { %v1361_v34 = vld [vmem:[#allocation2 + $0x20] ss:$2 sm:$0xff]  ;;  %v1365_v43 = vld [vmem:[#allocation2 + $0x21] ss:$2 sm:$0xff] }
 0x306   :  { %2197 = vpow2.f32 %v2101_v52  ;;  %v2102_v5 = vmul.f32 -1.442695, %v3344_v48  ;;  %v3347_v56 = vmax.f32 %v1361_v34, %v1365_v43 }
 0x307   :  { %v1362_v11 = vld [vmem:[#allocation2 + $0x30] ss:$2 sm:$0x7f]  ;;  %v1366_v33 = vld [vmem:[#allocation2 + $0x31] ss:$2 sm:$0x7f] }
 0x308   :  { %2199 = vpow2.f32 %v2102_v5  ;;  %v2103_v63 = vmul.f32 -1.442695, %v3347_v56  ;;  %v3350_v36 = vmax.f32 %v1362_v11, %v1366_v33 }
 0x30a   :  { %2201 = vpow2.f32 %v2103_v63  ;;  %v2104_v13 = vmul.f32 -1.442695, %v3350_v36 }
 0x30c   :  { %v2198_v20 = vpop.eup %2197  ;;  %2203 = vpow2.f32 %v2104_v13 }
 0x30d   :  { %v1383_v32 = vadd.f32 1.0, %v2198_v20 }
 0x30e   :  { %v2200_v30 = vpop.eup %2199 }
 0x30f   :  { %2205 = vrcp.f32 %v1383_v32  ;;  %v1384_v42 = vadd.f32 1.0, %v2200_v30  ;;  %v1396_v62 = vand.u32 2147483647, %v1383_v32  ;;  %v1398_v10 = vand.u32 2147483648, %v1383_v32 }
 0x310   :  { %v2202_v55 = vpop.eup %2201  ;;  %vm1392_vm8 = vweird.f32 %v1383_v32 }
 0x311   :  { %v1385_v28 = vadd.f32 1.0, %v2202_v55  ;;  %2207 = vrcp.f32 %v1384_v42  ;;  %vm3356_vm9 = vcmp.eq.f32.partialorder %v1396_v62, 8.507059e+37  ;;  %v1399_v51 = vor.u32 1.1754944e-38, %v1398_v10 }
 0x312   :  { %v2204_v41 = vpop.eup %2203  ;;  %vm1407_vm10 = vweird.f32 %v1384_v42  ;;  %v1413_v8 = vand.u32 2147483648, %v1384_v42  ;;  %v1411_v59 = vand.u32 2147483647, %v1384_v42 }
 0x313   :  { %2209 = vrcp.f32 %v1385_v28  ;;  %v3353_v21 = vadd.f32 1.0, %v2204_v41  ;;  %v1428_v61 = vand.u32 2147483648, %v1385_v28  ;;  %v1426_v49 = vand.u32 2147483647, %v1385_v28 }
 0x314   :  { %v1414_v7 = vor.u32 1.1754944e-38, %v1413_v8  ;;  %vm1422_vm6 = vweird.f32 %v1385_v28 }
 0x315   :  { %v2206_v12 = vpop.eup %2205  ;;  %2211 = vrcp.f32 %v3353_v21  ;;  %v1429_v24 = vor.u32 1.1754944e-38, %v1428_v61  ;;  %v1443_v2 = vand.u32 2147483648, %v3353_v21 }
 0x316   :  { %v1388_v47 = vmul.f32 %v2206_v12, %v1383_v32  ;;  %vm1393_vm5 = vweird.f32 %v2206_v12 }
 0x317   :  { %v2208_v3 = vpop.eup %2207  ;;  %vm1394_vm0 = vmor %vm1392_vm8, %vm1393_vm5  ;;  %vm1412_vm5 = vcmp.eq.f32.partialorder %v1411_v59, 8.507059e+37  ;;  %v1444_v5 = vor.u32 1.1754944e-38, %v1443_v2 }
 0x318   :  { %v1389_v26 = vsub.f32 1.0, %v1388_v47  ;;  %v1403_v25 = vmul.f32 %v2208_v3, %v1384_v42  ;;  %vm1408_vm13 = vweird.f32 %v2208_v3 }
 0x319   :  { %v2210_v14 = vpop.eup %2209  ;;  %vm1409_vm15 = vmor %vm1407_vm10, %vm1408_vm13 }
 0x31a   :  { %v1390_v35 = vmul.f32 %v2206_v12, %v1389_v26  ;;  %v1418_v15 = vmul.f32 %v2210_v14, %v1385_v28  ;;  %v1404_v53 = vsub.f32 1.0, %v1403_v25  ;;  %vm1423_vm14 = vweird.f32 %v2210_v14 }
 0x31b   :  { %v2212_v58 = vpop.eup %2211  ;;  %vm1424_vm8 = vmor %vm1422_vm6, %vm1423_vm14 }
 0x31c   :  { %v1391_v38 = vadd.f32 %v2206_v12, %v1390_v35  ;;  %v1419_v40 = vsub.f32 1.0, %v1418_v15  ;;  %v1405_v1 = vmul.f32 %v2208_v3, %v1404_v53  ;;  %v1433_v39 = vmul.f32 %v2212_v58, %v3353_v21 }
 0x31d   :  { %vm1438_vm10 = vweird.f32 %v2212_v58 }
 0x31e   :  { %v1395_v0 = vsel %vm1394_vm0, %v2206_v12, %v1391_v38  ;;  %v1420_v50 = vmul.f32 %v2210_v14, %v1419_v40  ;;  %v1406_v45 = vadd.f32 %v2208_v3, %v1405_v1  ;;  %v1434_v31 = vsub.f32 1.0, %v1433_v39 }
 0x31f   :  { %v1400_v27 = vsel %vm3356_vm9, %v1399_v51, %v1395_v0  ;;  %vm1427_vm9 = vcmp.eq.f32.partialorder %v1426_v49, 8.507059e+37  ;;  %vm1437_vm0 = vweird.f32 %v3353_v21 }
 0x320   :  { %v1447_v17 = vmul.f32 %v1400_v27, %v3341_v19  ;;  %v1421_v60 = vadd.f32 %v2210_v14, %v1420_v50  ;;  %v1410_v54 = vsel %vm1409_vm15, %v2208_v3, %v1406_v45  ;;  %v1435_v6 = vmul.f32 %v2212_v58, %v1434_v31  ;;  %vm1439_vm13 = vmor %vm1437_vm0, %vm1438_vm10 }
 0x321   :  { %v1415_v18 = vsel %vm1412_vm5, %v1414_v7, %v1410_v54 }
 0x322   :  { %2105 = vmatmul.msk.f32.vlgmr.msra.gmra.mxu3 %vm437_vm4, %v1447_v17  ;;  %v1425_v46 = vsel %vm1424_vm8, %v2210_v14, %v1421_v60  ;;  %v1448_v57 = vmul.f32 %v1415_v18, %v3344_v48  ;;  %v1508_v16 = vrot.slane %v1447_v17, 1  ;;  %v1560_v4 = vrot.slane %v1447_v17, 2 }
 0x323   :  { %v1430_v22 = vsel %vm1427_vm9, %v1429_v24, %v1425_v46  ;;  %v1436_v19 = vadd.f32 %v2212_v58, %v1435_v6  ;;  %v1441_v48 = vand.u32 2147483647, %v3353_v21 }
 0x324   :  { %v1509_v9 = vrot.slane %v1448_v57, 1  ;;  %v1561_v29 = vrot.slane %v1448_v57, 2  ;;  %v1449_v34 = vmul.f32 %v1430_v22, %v3347_v56 }
 0x325   :  { %v1440_v43 = vsel %vm1439_vm13, %v2212_v58, %v1436_v19  ;;  %vm1442_vm14 = vcmp.eq.f32.partialorder %v1441_v48, 8.507059e+37 }
 0x326   :  { %v1510_v37 = vsel %vm260_vm2, %v1508_v16, %v1509_v9  ;;  %v1562_v52 = vsel %vm357_vm3, %v1560_v4, %v1561_v29  ;;  %v1511_v11 = vrot.slane %v1449_v34, 1  ;;  %v1563_v33 = vrot.slane %v1449_v34, 2 }
 0x327   :  { %2109 = vmatmul.msk.f32.vlgmr.msra.gmra.mxu0 %vm437_vm4, %v1510_v37  ;;  %2113 = vmatmul.msk.f32.vlgmr.msra.gmra.mxu1 %vm437_vm4, %v1562_v52  ;;  %v1445_v63 = vsel %vm1442_vm14, %v1444_v5, %v1440_v43  ;;  %v3525_v52 = vld [vmem:[#allocation18_spill] sm:$0xff]  ;;  %v3527_v5 = vld [vmem:[#allocation20_spill] sm:$0xff] }
 0x328   :  { %v1512_v13 = vsel %vm260_vm2, %v1509_v9, %v1511_v11  ;;  %v1564_v20 = vsel %vm357_vm3, %v1561_v29, %v1563_v33  ;;  %v1450_v56 = vmul.f32 %v1445_v63, %v3350_v36  ;;  %v2162_v36 = vld [vmem:[%s3464_s6] ss:$0 sm:$0xff] }
 0x32a   :  { %2106 = vmatmul.msk.f32.gmra.mxu3 %vm437_vm4, %v1448_v57  ;;  %v1513_v32 = vrot.slane %v1450_v56, 1  ;;  %v1565_v30 = vrot.slane %v1450_v56, 2 }
 0x32c   :  { %v1514_v55 = vsel %vm260_vm2, %v1511_v11, %v1513_v32  ;;  %v1566_v42 = vsel %vm357_vm3, %v1563_v33, %v1565_v30  ;;  %v3528_v33 = vld [vmem:[#allocation21_spill] sm:$0xff] }
 0x32f   :  { %2110 = vmatmul.msk.f32.gmra.mxu0 %vm437_vm4, %v1512_v13  ;;  %2114 = vmatmul.msk.f32.gmra.mxu1 %vm437_vm4, %v1564_v20 }
 0x332   :  { %2107 = vmatmul.msk.f32.gmra.mxu3 %vm437_vm4, %v1449_v34  ;;  %v3526_v34 = vld [vmem:[#allocation19_spill] sm:$0xff] }
 0x337   :  { %2111 = vmatmul.msk.f32.gmra.mxu0 %vm437_vm4, %v1514_v55  ;;  %2115 = vmatmul.msk.f32.gmra.mxu1 %vm437_vm4, %v1566_v42 }
 0x33a   :  { %2108 = vmatmul.msk.f32.gmra.mxu3 %vm437_vm4, %v1450_v56 }
 0x33f   :  { %2112 = vmatmul.msk.f32.gmra.mxu0 %vm437_vm4, %v1513_v32  ;;  %2116 = vmatmul.msk.f32.gmra.mxu1 %vm437_vm4, %v1565_v30 }
 0x3a4   :  { %v1540_v28 = vpop.f32.mrf.mxu0  ;;  %v1592_v41 = vpop.f32.mrf.mxu1 }
 0x3a5   :  { %v1485_v21 = vpop.f32.mrf.mxu3 }
 0x3a6   :  { %v1500_v12 = vadd.f32 %v2162_v36, %v1485_v21 }
 0x3a8   :  { %v1552_v47 = vadd.f32 %v1540_v28, %v1500_v12 }
 0x3aa   :  { %v1604_v62 = vadd.f32 %v1592_v41, %v1552_v47 }
 0x3ac   :  { %1608 = vst.msk [vmem:[#allocation3] sm:$0xff] %vm437_vm4, %v1604_v62  ;;  %v1543_v10 = vpop.f32.mrf.mxu0  ;;  %v1595_v3 = vpop.f32.mrf.mxu1 }
 0x3ad   :  { %v1488_v26 = vpop.f32.mrf.mxu3 }
 0x3ae   :  { %v1501_v14 = vadd.f32 %v2162_v36, %v1488_v26 }
 0x3b0   :  { %v1553_v25 = vadd.f32 %v1543_v10, %v1501_v14 }
 0x3b2   :  { %v1605_v35 = vadd.f32 %v1595_v3, %v1553_v25  ;;  %v2163_v3 = vld [vmem:[%s3466_s8] ss:$0 sm:$0xff]  ;;  %s1989_s8 = sshll.u32 %s2364_s27, 4  ;;  %s1990_s8 = int_to_ptr.vmem [resolvable:$true] %s1989_s8 }
 0x3b4   :  { %1609 = vst.msk [vmem:[#allocation3 + $0x8] sm:$0xff] %vm437_vm4, %v1605_v35  ;;  %v1546_v15 = vpop.f32.mrf.mxu0  ;;  %v1598_v53 = vpop.f32.mrf.mxu1 }
 0x3b5   :  { %v1491_v23 = vpop.f32.mrf.mxu3 }
 0x3b6   :  { %v1502_v51 = vadd.f32 %v2162_v36, %v1491_v23 }
 0x3b8   :  { %v1554_v58 = vadd.f32 %v1546_v15, %v1502_v51 }
 0x3ba   :  { %v1606_v38 = vadd.f32 %v1598_v53, %v1554_v58 }
 0x3bb   :  { %v1612_v8 = vld [vmem:[#allocation3] ss:$2 sm:$0xff]  ;;  %v1614_v40 = vld [vmem:[#allocation3 + $0x1] ss:$2 sm:$0xff] }
 0x3bc   :  { %1610 = vst.msk [vmem:[#allocation3 + $0x10] sm:$0xff] %vm437_vm4, %v1606_v38  ;;  %v1616_v1 = vmax.f32 %v1612_v8, %v1614_v40  ;;  %v1549_v50 = vpop.f32.mrf.mxu0  ;;  %v1601_v27 = vpop.f32.mrf.mxu1 }
 0x3bd   :  { %v1494_v59 = vpop.f32.mrf.mxu3 }
 0x3be   :  { %v1503_v39 = vadd.f32 %v2162_v36, %v1494_v59  ;;  %v2117_v0 = vmul.f32 -1.442695, %v1616_v1 }
 0x3c0   :  { %v1555_v61 = vadd.f32 %v1549_v50, %v1503_v39  ;;  %2213 = vpow2.f32 %v2117_v0 }
 0x3c2   :  { %v1607_v45 = vadd.f32 %v1601_v27, %v1555_v61 }
 0x3c4   :  { %1611 = vst.msk [vmem:[#allocation3 + $0x18] sm:$0x1f] %vm708_vm12, %v1607_v45 }
 0x3c6   :  { %v2214_v49 = vpop.eup %2213 }
 0x3c7   :  { %v1624_v31 = vadd.f32 1.0, %v2214_v49 }
 0x3c9   :  { %2215 = vrcp.f32 %v1624_v31  ;;  %v1637_v24 = vand.u32 2147483648, %v1624_v31  ;;  %v1635_v16 = vand.u32 2147483647, %v1624_v31  ;;  %vm1631_vm6 = vweird.f32 %v1624_v31 }
 0x3cb   :  { %v1613_v17 = vld [vmem:[#allocation3 + $0x10] ss:$2 sm:$0x3f]  ;;  %v1615_v7 = vld [vmem:[#allocation3 + $0x11] ss:$2 sm:$0x3f] }
 0x3cc   :  { %v1617_v60 = vmax.f32 %v1613_v17, %v1615_v7  ;;  %v1638_v9 = vor.u32 1.1754944e-38, %v1637_v24  ;;  %vm1636_vm12 = vcmp.eq.f32.partialorder %v1635_v16, 8.507059e+37  ;;  %v1923_v24 = vld [vmem:[%s3471_s13 + $0x8] sm:$0xff] }
 0x3cd   :  { %v1893_v16 = vld [vmem:[%s3469_s11 + $0x8] sm:$0xff]  ;;  %1942 = vmatpush.msra.mxu1 %v1923_v24 }
 0x3ce   :  { %v2118_v6 = vmul.f32 -1.442695, %v1617_v60  ;;  %1916 = vmatpush.msra.mxu0 %v1893_v16 }
 0x3cf   :  { %v2216_v54 = vpop.eup %2215 }
 0x3d0   :  { %v1627_v18 = vmul.f32 %v2216_v54, %v1624_v31  ;;  %2217 = vpow2.f32 %v2118_v6  ;;  %vm1632_vm15 = vweird.f32 %v2216_v54 }
 0x3d1   :  { %vm1633_vm5 = vmor %vm1631_vm6, %vm1632_vm15 }
 0x3d2   :  { %v1628_v46 = vsub.f32 1.0, %v1627_v18 }
 0x3d4   :  { %v1629_v57 = vmul.f32 %v2216_v54, %v1628_v46 }
 0x3d6   :  { %v1630_v4 = vadd.f32 %v2216_v54, %v1629_v57  ;;  %v2218_v22 = vpop.eup %2217  ;;  %v1922_v57 = vld [vmem:[%s3471_s13] sm:$0xff] }
 0x3d7   :  { %v1625_v19 = vadd.f32 1.0, %v2218_v22  ;;  %1943 = vmatpush.msra.mxu1 %v1922_v57  ;;  %v2164_v22 = vld [vmem:[%s3468_s10] ss:$0 sm:$0xff]  ;;  %s2362_s10 = smov [#allocation8]  }
 0x3d8   :  { %v1634_v29 = vsel %vm1633_vm5, %v2216_v54, %v1630_v4  ;;  %v1892_v4 = vld [vmem:[%s3469_s11] sm:$0xff]  ;;  %s1978_s11 = sshll.u32 %s2362_s10, 4  ;;  %s1979_s11 = int_to_ptr.vmem [resolvable:$true] %s1978_s11 }
 0x3d9   :  { %v1639_v2 = vsel %vm1636_vm12, %v1638_v9, %v1634_v29  ;;  %2219 = vrcp.f32 %v1625_v19  ;;  %v1652_v63 = vand.u32 2147483648, %v1625_v19  ;;  %v1650_v20 = vand.u32 2147483647, %v1625_v19  ;;  %1917 = vmatpush.msra.mxu0 %v1892_v4 }
 0x3da   :  { %v1656_v37 = vmul.f32 %v1639_v2, %v1616_v1  ;;  %vm1646_vm9 = vweird.f32 %v1625_v19 }
 0x3db   :  { %v1653_v32 = vor.u32 1.1754944e-38, %v1652_v63  ;;  %vm1651_vm0 = vcmp.eq.f32.partialorder %v1650_v20, 8.507059e+37 }
 0x3dc   :  { %2119 = vmatmul.msk.f32.vlgmr.msrb.gmra.mxu2 %vm437_vm4, %v1656_v37  ;;  %v1737_v28 = vrot.slane %v1656_v37, 2  ;;  %v1701_v12 = vrot.slane %v1656_v37, 1 }
 0x3dd   :  { %1873 = vmatpush.msrb.mxu2 %v3525_v52 }
 0x3df   :  { %1874 = vmatpush.msrb.mxu2 %v3526_v34  ;;  %v2220_v48 = vpop.eup %2219 }
 0x3e0   :  { %v1642_v43 = vmul.f32 %v2220_v48, %v1625_v19  ;;  %vm1647_vm8 = vweird.f32 %v2220_v48 }
 0x3e1   :  { %1875 = vmatpush.msrb.mxu2 %v3527_v5  ;;  %vm1648_vm10 = vmor %vm1646_vm9, %vm1647_vm8 }
 0x3e2   :  { %v1643_v11 = vsub.f32 1.0, %v1642_v43 }
 0x3e3   :  { %1876 = vmatpush.msrb.mxu2 %v3528_v33 }
 0x3e4   :  { %v1644_v13 = vmul.f32 %v2220_v48, %v1643_v11 }
 0x3e6   :  { %v1645_v56 = vadd.f32 %v2220_v48, %v1644_v13 }
 0x3e8   :  { %v1649_v30 = vsel %vm1648_vm10, %v2220_v48, %v1645_v56  ;;  %v2165_v56 = vld [vmem:[%s3470_s12] ss:$0 sm:$0xff]  ;;  %s2363_s12 = smov [#allocation12]  }
 0x3e9   :  { %v1654_v55 = vsel %vm1651_vm0, %v1653_v32, %v1649_v30 }
 0x3ea   :  { %v1657_v42 = vmul.f32 %v1654_v55, %v1617_v60 }
 0x3ec   :  { %2120 = vmatmul.msk.f32.gmra.mxu2 %vm437_vm4, %v1657_v42  ;;  %v1738_v36 = vrot.slane %v1657_v42, 2  ;;  %v1702_v21 = vrot.slane %v1657_v42, 1 }
 0x3ee   :  { %v1739_v41 = vsel %vm357_vm3, %v1737_v28, %v1738_v36  ;;  %v1703_v47 = vsel %vm260_vm2, %v1701_v12, %v1702_v21 }
 0x3ef   :  { %2131 = vmatmul.msk.f32.vlgmr.msrb.gmra.mxu3 %vm437_vm4, %v1739_v41 }
 0x3f4   :  { %2125 = vmatmul.msk.f32.vlgmr.msra.gmra.mxu2 %vm437_vm4, %v1703_v47 }
 0x3f7   :  { %2132 = vmatmul.msk.f32.gmra.mxu3 %vm437_vm4, %v1738_v36 }
 0x3fc   :  { %2126 = vmatmul.msk.f32.gmra.mxu2 %vm437_vm4, %v1702_v21 }
 0x45f   :  { %v1686_v62 = vpop.f32.mrf.mxu2 }
 0x460   :  { %v1695_v26 = vadd.f32 %v2163_v3, %v1686_v62 }
 0x46f   :  { %v1689_v10 = vpop.f32.mrf.mxu2 }
 0x470   :  { %v1696_v23 = vadd.f32 %v2163_v3, %v1689_v10 }
 0x472   :  { %v1761_v14 = vpop.f32.mrf.mxu3 }
 0x477   :  { %v1725_v25 = vpop.f32.mrf.mxu2 }
 0x478   :  { %v1731_v35 = vadd.f32 %v1725_v25, %v1695_v26 }
 0x47a   :  { %v1767_v15 = vadd.f32 %v1761_v14, %v1731_v35  ;;  %v1764_v58 = vpop.f32.mrf.mxu3 }
 0x47c   :  { %1769 = vst.msk [vmem:[#allocation4] sm:$0xff] %vm437_vm4, %v1767_v15 }
 0x47f   :  { %v1728_v51 = vpop.f32.mrf.mxu2 }
 0x480   :  { %v1732_v53 = vadd.f32 %v1728_v51, %v1696_v23  ;;  %v1969_v23 = vld [vmem:[%s3473_s15] sm:$0x3] }
 0x482   :  { %v1768_v38 = vadd.f32 %v1764_v58, %v1732_v53 }
 0x484   :  { %1770 = vst.msk [vmem:[#allocation4 + $0x8] sm:$0xf] %vm873_vm11, %v1768_v38 }
 0x48b   :  { %v1771_v8 = vld [vmem:[#allocation4] ss:$2 sm:$0x3f]  ;;  %v1772_v40 = vld [vmem:[#allocation4 + $0x1] ss:$2 sm:$0x3f] }
 0x48c   :  { %v1773_v1 = vmax.f32 %v1771_v8, %v1772_v40 }
 0x48e   :  { %v2133_v59 = vmul.f32 -1.442695, %v1773_v1 }
 0x490   :  { %2221 = vpow2.f32 %v2133_v59 }
 0x496   :  { %v2222_v39 = vpop.eup %2221 }
 0x497   :  { %v1777_v0 = vadd.f32 1.0, %v2222_v39 }
 0x499   :  { %2223 = vrcp.f32 %v1777_v0  ;;  %v1789_v45 = vand.u32 2147483648, %v1777_v0  ;;  %v1787_v31 = vand.u32 2147483647, %v1777_v0  ;;  %vm1783_vm3 = vweird.f32 %v1777_v0 }
 0x49b   :  { %v1790_v7 = vor.u32 1.1754944e-38, %v1789_v45  ;;  %vm1788_vm11 = vcmp.eq.f32.partialorder %v1787_v31, 8.507059e+37 }
 0x49f   :  { %v2224_v50 = vpop.eup %2223 }
 0x4a0   :  { %v1779_v61 = vmul.f32 %v2224_v50, %v1777_v0  ;;  %vm1784_vm2 = vweird.f32 %v2224_v50 }
 0x4a1   :  { %vm1785_vm13 = vmor %vm1783_vm3, %vm1784_vm2 }
 0x4a2   :  { %v1780_v27 = vsub.f32 1.0, %v1779_v61 }
 0x4a4   :  { %v1781_v49 = vmul.f32 %v2224_v50, %v1780_v27 }
 0x4a6   :  { %v1782_v17 = vadd.f32 %v2224_v50, %v1781_v49 }
 0x4a8   :  { %v1786_v60 = vsel %vm1785_vm13, %v2224_v50, %v1782_v17 }
 0x4a9   :  { %v1791_v54 = vsel %vm1788_vm11, %v1790_v7, %v1786_v60 }
 0x4aa   :  { %v1793_v6 = vmul.f32 %v1791_v54, %v1773_v1 }
 0x4ac   :  { %2134 = vmatmul.msk.f32.vlgmr.msrb.gmra.mxu0 %vm437_vm4, %v1793_v6  ;;  %v1830_v18 = vrot.slane %v1793_v6, 1  ;;  %v1858_v46 = vrot.slane %v1793_v6, 2 }
 0x4ae   :  { %2139 = vmatmul.msk.f32.vlgmr.msrb.gmra.mxu1 %vm437_vm4, %v1830_v18  ;;  %2144 = vmatmul.msk.f32.vlgmr.msrb.gmra.mxu2 %vm437_vm4, %v1858_v46  ;;  %vm1898_vm4 = vcmask 130048  }
 0x529   :  { %v1819_v9 = vpop.f32.mrf.mxu0 }
 0x52a   :  { %v1825_v29 = vadd.f32 %v2164_v22, %v1819_v9 }
 0x52b   :  { %v1850_v19 = vpop.f32.mrf.mxu1 }
 0x52c   :  { %v1853_v2 = vadd.f32 %v1850_v19, %v1825_v29 }
 0x531   :  { %v1878_v37 = vpop.f32.mrf.mxu2 }
 0x532   :  { %v1881_v52 = vadd.f32 %v1878_v37, %v1853_v2 }
 0x534   :  { %v1882_v34 = vsel %vm989_vm1, %v1881_v52, 0.0  ;;  %vm1966_vm1 = vcmask 123904  }
 0x535   :  { %v1883_v48 = vrot.slane %v1882_v34, 4 }
 0x537   :  { %v1884_v43 = vadd.f32 %v1883_v48, %v1882_v34 }
 0x539   :  { %v1885_v5 = vrot.slane %v1884_v43, 2 }
 0x53b   :  { %v1886_v11 = vadd.f32 %v1885_v5, %v1884_v43 }
 0x53d   :  { %v1887_v33 = vrot.slane %v1886_v11, 1 }
 0x53f   :  { %v1888_v63 = vadd.f32 %v1887_v33, %v1886_v11 }
 0x541   :  { %v1889_v13 = vmul.f32 %v1888_v63, %v3333_v44  ;;  %v2166_v44 = vld [vmem:[%s3472_s14] ss:$0 sm:$0xff]  ;;  %s2011_s14 = sshll.u32 %s2363_s12, 4  ;;  %s2012_s14 = int_to_ptr.vmem [resolvable:$true] %s2011_s14 }
 0x543   :  { %1890 = vst.msk [vmem:[#allocation8 + $0x1] sm:$0x1] %vm1005_vm7, %v1889_v13 }
 0x544   :  { %1983 = dma.vmem_to_hbm [thread:$0]  %s1979_s11, 32, %s1981_s9, [#allocation7]  }
 0x54a   :  { %v1891_v20 = vld [vmem:[#allocation8] sm:$0x3] }
 0x54b   :  { %2145 = vmatmul.msk.f32.vlgmr.msra.gmra.mxu0 %vm1898_vm4, %v1891_v20  ;;  %2146 = vmatmul.msk.f32.vlgmr.msra.gmra.mxu1 %vm1898_vm4, %v1891_v20 }
 0x5c8   :  { %v1919_v32 = vpop.f32.mrf.mxu0  ;;  %v1945_v30 = vpop.f32.mrf.mxu1 }
 0x5c9   :  { %v1920_v55 = vadd.f32 %v2165_v56, %v1919_v32  ;;  %v1946_v42 = vadd.f32 %v2166_v44, %v1945_v30 }
 0x5cb   :  { %1967 = vst.msk [vmem:[#allocation11] sm:$0x3] %vm1966_vm1, %v1920_v55  ;;  %v1951_v36 = vand.u32 2147483647, %v1946_v42  ;;  %v1948_v25 = vmax.f32 %v1946_v42, 0.0  ;;  %vm1949_vm14 = vcmp.ne.f32.partialorder %v1946_v42, %v1946_v42 }
 0x5cd   :  { %v1952_v28 = vsub.f32 0.0, %v1951_v36 }
 0x5cf   :  { %v1953_v41 = vmul.f32 1.442695, %v1952_v28 }
 0x5d1   :  { %2225 = vpow2.f32 %v1953_v41 }
 0x5d7   :  { %v2226_v21 = vpop.eup %2225 }
 0x5d8   :  { %v1955_v12 = vadd.f32 1.0, %v2226_v21  ;;  %v1958_v47 = vmul.f32 -0.5, %v2226_v21  ;;  %v1961_v10 = vand.u32 2147483647, %v2226_v21 }
 0x5da   :  { %2227 = vlog2.f32 %v1955_v12  ;;  %v1959_v62 = vadd.f32 1.0, %v1958_v47  ;;  %vm1962_vm7 = vcmp.lt.f32.partialorder %v1961_v10, 0.0004427343 }
 0x5dc   :  { %v1960_v14 = vmul.f32 %v2226_v21, %v1959_v62 }
 0x5e0   :  { %v2228_v3 = vpop.eup %2227 }
 0x5e1   :  { %v1957_v26 = vmul.f32 0.6931472, %v2228_v3 }
 0x5e3   :  { %v1963_v35 = vsel %vm1962_vm7, %v1960_v14, %v1957_v26 }
 0x5e4   :  { %v1964_v15 = vadd.f32 %v1963_v35, %v1948_v25 }
 0x5e6   :  { %v1965_v51 = vsel %vm1949_vm14, %v1946_v42, %v1964_v15 }
 0x5e7   :  { %v1970_v53 = vmul.f32 %v1969_v23, %v1965_v51  ;;  %1968 = vst.msk [vmem:[#allocation12] sm:$0x3] %vm1966_vm1, %v1965_v51 }
 0x5e8   :  { %2016 = dma.vmem_to_hbm [thread:$0]  %s2012_s14, 32, %s2014_s4, [#allocation13]  }
 0x5e9   :  { %v1971_v58 = vadd.f32 %v1970_v53, %v1920_v55 }
 0x5eb   :  { %1972 = vst.msk [vmem:[#allocation9] sm:$0x3] %vm1966_vm1, %v1971_v58 }
 0x5ec   :  { %1994 = dma.vmem_to_hbm [thread:$0]  %s1990_s8, 32, %s1992_s29, [#allocation10]  }
 0x5ed   :  { %2005 = dma.vmem_to_hbm [thread:$0]  %s2001_s25, 32, %s2003_s30, [#allocation10]  }
 0x5ee   :  { %2351 = dma.done.wait [#allocation7], 32  }
 0x5ef   :  { %2352 = vsyncadd [#allocation7], 4294967264 }
 0x5f0   :  { %2353 = dma.done.wait [#allocation10], 64  }
 0x5f1   :  { %2354 = vsyncadd [#allocation10], 4294967232 }
 0x5f2   :  { %2355 = dma.done.wait [#allocation13], 32  }
 0x5f3   :  { %2356 = vsyncadd [#allocation13], 4294967264 }
 0x5f4   :  { %2033 = vsyncpa [#allocation6], 1 }
 0x5f5   :  { %2034 = vsyncpa [#allocation7], 1 }
 0x5f6   :  { %2035 = vsyncpa [#allocation10], 1 }
 0x5f7   :  { %2036 = vsyncpa [#allocation13], 1 }

</bundles_post_ra>
